<compile_context>
chip_gen: v6e
topology: v6e:2x2x1
jax: 0.10.0
libtpu: 0.0.40
codegen_flags: <defaults>
</compile_context>

<pallas_src>
import functools
from math import ceil

import jax
import jax.numpy as jnp
from jax.experimental import pallas as pl
from jax.experimental.pallas import tpu as pltpu


# ------------------------------ Pallas kernel --------------------------------

def braingnn_fused_kernel(
        x_ref, a_ref, h1r1_ref, h1r2_ref, t1_ref, t2_ref,
        w2s1_ref, w2s2_ref, p1_ref, p2_ref,
        fc1w_ref, fc1b_ref, bn1g_ref, bn1b_ref,
        fc2w_ref, fc2b_ref, bn2g_ref, bn2b_ref,
        fc3w_ref, fc3b_ref,
        score1_ref, score2_ref, logits_ref,
        r_scr,
        *, n_nodes, k1, k2):
    """Whole BrainGNN 'Network' forward (eval mode) in one kernel.

    x_ref     : [B*N, N]        flattened node features (pearson rows)
    a_ref     : [B*N, B*N]      block-diag |pearson|; off-block entries == -1e30
    h1r*_ref  : [B*N, kh*fin]   relu(pos@w1) replicated fin times along lanes
    t*_ref    : [fin, kh*fin]   0/1 replication matrices (x -> x tiled kh times)
    w2s*_ref  : [kh*fin, fout]  stacked weight-generator second matrices
    p*_ref    : [1, fout]       L2-normalized TopK projection weights
    fc*/bn*   : fused fc head params (BatchNorm in eval mode, folded scale/shift)
    outputs   : sigmoid(score1) [B*N,1], sigmoid(score2) masked to stage-1 nodes
                [B*N,1], logits [B, nclass]
    r_scr     : [B, 2*(d1+d2)]  VMEM scratch for the lane-dense readout.
    """
    f32 = jnp.float32
    NEG = f32(-1e30)
    BN = x_ref.shape[0]
    B = BN // n_nodes
    d1 = w2s1_ref.shape[1]
    d2 = w2s2_ref.shape[1]

    # flat-node index helpers (comparisons only, no vector integer div/mod)
    row_i = jax.lax.broadcasted_iota(jnp.int32, (BN, BN), 0)
    col_i = jax.lax.broadcasted_iota(jnp.int32, (BN, BN), 1)
    is_diag = row_i == col_i

    a_in = a_ref[...]                        # [BN, BN]
    same_graph = a_in > f32(-1e20)           # block-diagonal membership mask
    a_raw = jnp.maximum(a_in, 0.0)           # |corr| in-block, 0 off-block

    def row_softmax(logits):
        z = logits - jnp.max(logits, axis=-1, keepdims=True)
        e = jnp.exp(z)
        return e * pl.reciprocal(jnp.sum(e, axis=-1, keepdims=True), approx=True)

    def ragconv(x, t_exp, h1rep, w2s, adj_logits):
        # node-conditioned transform: h = ((x @ T) * relu(pos@w1)_rep) @ w2_stack
        xrep = jnp.dot(x, t_exp, preferred_element_type=f32)         # [BN, kh*fin]
        h = jnp.dot(xrep * h1rep, w2s, preferred_element_type=f32)   # [BN, fout]
        # per-destination softmax over the graph's own columns, then aggregate
        # TODO(synk): dense row-softmax assumes fully-connected correlation
        # graphs (matches |pearson| inputs; diverges for truly sparse graphs).
        p = row_softmax(adj_logits)
        return jnp.maximum(jnp.dot(p, h, preferred_element_type=f32), 0.0)

    def topk_stats(out, pwn, extra_row, extra_col):
        # TopK score via one MXU matmul; the column view is a bit-exact copy of
        # the row view (diagonal extraction) so pairwise comparisons stay
        # consistent.  beat[m, m'] = 1 iff node m' out-ranks node m
        # (ties broken by lower flat index, matching lax.top_k).
        s_row = jnp.dot(pwn, out.T, preferred_element_type=f32)      # [1, BN]
        s_col = jnp.sum(jnp.where(is_diag, s_row, 0.0),
                        axis=-1, keepdims=True)                      # [BN, 1]
        beat = (s_row > s_col) | ((s_row == s_col) & (col_i < row_i))
        beat = beat & same_graph & (col_i != row_i)
        if extra_row is not None:
            beat = beat & extra_row
        if extra_col is not None:
            beat = beat & extra_col
        beat_f = beat.astype(f32)
        rank_col = jnp.sum(beat_f, axis=-1, keepdims=True)           # [BN, 1]
        beaten_row = jnp.sum(beat_f, axis=0, keepdims=True)          # [1, BN]
        return s_col, rank_col, beaten_row

    # ---------------- Ra-GConv layer 1 + TopK pooling 1 ----------------------
    x0 = x_ref[...]
    out1 = ragconv(x0, t1_ref[...], h1r1_ref[...], w2s1_ref[...], a_in)

    s1, rank1, beaten1 = topk_stats(out1, p1_ref[...], None, None)
    sel1_col = rank1 < k1                              # [BN, 1] keep-mask (rows)
    sel1_row = beaten1 >= (n_nodes - k1)               # [1, BN] keep-mask (cols)
    sg1 = jax.nn.sigmoid(s1)
    x1p = out1 * sg1                                   # TopK-scaled features

    # ---------------- Ra-GConv layer 2 (two-hop augmented) + pooling 2 -------
    # augment_adj equivalent: zero the pooled-out rows, square the adjacency
    # (self-loops kept: pearson diag ~ 1), softmax over surviving columns only.
    a_sel = jnp.where(sel1_col, a_raw, 0.0)
    a2 = jnp.dot(a_sel, a_sel, preferred_element_type=f32)
    adj2 = jnp.where(same_graph & sel1_row, a2, NEG)
    out2 = ragconv(x1p, t2_ref[...], h1r2_ref[...], w2s2_ref[...], adj2)

    s2, rank2, _ = topk_stats(out2, p2_ref[...], sel1_row, sel1_col)
    sel2_col = sel1_col & (rank2 < k2)
    sg2 = jax.nn.sigmoid(s2)
    x2p = out2 * sg2

    # ---------------- readout (max|mean over selected nodes) -----------------
    f1max = jnp.where(sel1_col, x1p, NEG)
    f1sum = jnp.where(sel1_col, x1p, 0.0)
    f2max = jnp.where(sel2_col, x2p, NEG)
    f2sum = jnp.where(sel2_col, x2p, 0.0)

    for b in range(B):                                 # B is tiny and static
        lo = b * n_nodes
        mx1 = jnp.max(f1max[lo:lo + n_nodes], axis=0, keepdims=True)          # [1,d1]
        mn1 = jnp.sum(f1sum[lo:lo + n_nodes], axis=0, keepdims=True) * (1.0 / k1)
        mx2 = jnp.max(f2max[lo:lo + n_nodes], axis=0, keepdims=True)          # [1,d2]
        mn2 = jnp.sum(f2sum[lo:lo + n_nodes], axis=0, keepdims=True) * (1.0 / k2)
        # lane-dense readout slab: [max1 | mean1 | max2 | mean2]
        r_scr[pl.ds(b, 1), pl.ds(0, d1)] = mx1
        r_scr[pl.ds(b, 1), pl.ds(d1, d1)] = mn1
        r_scr[pl.ds(b, 1), pl.ds(2 * d1, d2)] = mx2
        r_scr[pl.ds(b, 1), pl.ds(2 * d1 + d2, d2)] = mn2

    # ---------------- fc head (fc1 -> ReLU -> BN1 -> fc2 -> ReLU -> BN2 -> fc3)
    # TODO(synk): dropout layers are identity in eval mode (no RNG applied).
    r_all = r_scr[...]                                                 # [B, 2*(d1+d2)]
    h = jnp.maximum(jnp.dot(r_all, fc1w_ref[...], preferred_element_type=f32)
                    + fc1b_ref[...], 0.0)
    h = h * bn1g_ref[...] + bn1b_ref[...]
    h = jnp.maximum(jnp.dot(h, fc2w_ref[...], preferred_element_type=f32)
                    + fc2b_ref[...], 0.0)
    h = h * bn2g_ref[...] + bn2b_ref[...]
    # TODO(synk): nclass==1 makes the canonical log_softmax degenerate; raw fc3
    # logits are returned (matches the previous accepted baseline).
    logits_ref[...] = (jnp.dot(h, fc3w_ref[...], preferred_element_type=f32)
                       + fc3b_ref[...])

    # ---------------- score outputs ------------------------------------------
    # TODO(synk): PyG returns the compacted scores of the pooled nodes; here the
    # stage-2 scores are reported as a full per-node map masked to the stage-1
    # survivors (zeros elsewhere).
    score1_ref[...] = sg1
    score2_ref[...] = jnp.where(sel1_col, sg2, 0.0)


# --------------------------- one-time parameter prep -------------------------

def prepare_params(params, batch_size):
    """Hoists all layout/weight rework out of the per-call forward path.

    pos/pseudo is the one-hot ROI identity, so relu(pos @ w1) is just relu(w1),
    tiled over the batch and replicated along lanes to match the x_tilde layout.
    """
    n_nodes, kh1 = params["conv1_w1"].shape
    kh2 = params["conv2_w1"].shape[1]
    d1 = params["pool1_w"].shape[0]
    d2 = params["pool2_w"].shape[0]
    fin1 = n_nodes

    r1 = jax.nn.relu(params["conv1_w1"])                  # [N, kh]
    r2 = jax.nn.relu(params["conv2_w1"])                  # [N, kh]
    h1rep1 = jnp.tile(jnp.repeat(r1, fin1, axis=1), (batch_size, 1))   # [B*N, kh*fin1]
    h1rep2 = jnp.tile(jnp.repeat(r2, d1, axis=1), (batch_size, 1))     # [B*N, kh*d1]

    # stacked weight-generator second matrices: w2s[j*fin+f, o] = w2[j, f*fout+o]
    w2s1 = params["conv1_w2"].reshape(kh1 * fin1, d1)
    w2s2 = params["conv2_w2"].reshape(kh2 * d1, d2)

    # 0/1 replication matrices: (x @ T)[m, j*fin+f] = x[m, f]
    t1 = (jnp.arange(kh1 * fin1) % fin1
          == jnp.arange(fin1)[:, None]).astype(jnp.float32)            # [fin1, kh1*fin1]
    t2 = (jnp.arange(kh2 * d1) % d1
          == jnp.arange(d1)[:, None]).astype(jnp.float32)              # [d1, kh2*d1]

    p1, p2 = params["pool1_w"], params["pool2_w"]
    pool1_wn = (p1 / (jnp.linalg.norm(p1) + 1e-12)).reshape(1, d1)
    pool2_wn = (p2 / (jnp.linalg.norm(p2) + 1e-12)).reshape(1, d2)

    return {
        "h1rep1": h1rep1, "h1rep2": h1rep2, "t1": t1, "t2": t2,
        "w2s1": w2s1, "w2s2": w2s2,
        "pool1_wn": pool1_wn, "pool2_wn": pool2_wn,
        "fc1_w": params["fc1_w"], "fc1_b": params["fc1_b"],
        "bn1_g": params["bn1_g"], "bn1_b": params["bn1_b"],
        "fc2_w": params["fc2_w"], "fc2_b": params["fc2_b"],
        "bn2_g": params["bn2_g"], "bn2_b": params["bn2_b"],
        "fc3_w": params["fc3_w"], "fc3_b": params["fc3_b"],
    }


# --------------------------------- forward -----------------------------------

@functools.partial(jax.jit, static_argnames=("n_nodes", "k1", "k2"))
def braingnn_forward(prep, pearson_corr, *, n_nodes, k1, k2):
    """Full BrainGNN Network forward (eval) as a single fused pallas_call."""
    B = pearson_corr.shape[0]
    BN = B * n_nodes
    nclass = prep["fc3_w"].shape[-1]
    d_read = prep["fc1_w"].shape[0]

    x0 = pearson_corr.reshape(BN, n_nodes).astype(jnp.float32)

    # block-diagonal |pearson| adjacency over the flat node axis; off-block
    # entries carry a -1e30 sentinel (softmax mask + graph-membership tag).
    a_abs = jnp.abs(pearson_corr).astype(jnp.float32)
    gid = jnp.arange(BN) // n_nodes
    blk = gid[:, None] == gid[None, :]
    a_bd = (a_abs[:, :, None, :]
            * jnp.eye(B, dtype=jnp.float32)[:, None, :, None]).reshape(BN, BN)
    a_in = jnp.where(blk, a_bd, jnp.float32(-1e30))

    vmem = pl.BlockSpec(memory_space=pltpu.MemorySpace.VMEM)
    args = (x0, a_in, prep["h1rep1"], prep["h1rep2"], prep["t1"], prep["t2"],
            prep["w2s1"], prep["w2s2"], prep["pool1_wn"], prep["pool2_wn"],
            prep["fc1_w"], prep["fc1_b"], prep["bn1_g"], prep["bn1_b"],
            prep["fc2_w"], prep["fc2_b"], prep["bn2_g"], prep["bn2_b"],
            prep["fc3_w"], prep["fc3_b"])
    kernel = functools.partial(braingnn_fused_kernel,
                               n_nodes=n_nodes, k1=k1, k2=k2)
    score1, score2, logits = pl.pallas_call(
        kernel,
        out_shape=(jax.ShapeDtypeStruct((BN, 1), jnp.float32),
                   jax.ShapeDtypeStruct((BN, 1), jnp.float32),
                   jax.ShapeDtypeStruct((B, nclass), jnp.float32)),
        in_specs=[vmem] * len(args),
        out_specs=(vmem, vmem, vmem),
        scratch_shapes=[pltpu.VMEM((B, d_read), jnp.float32)],
    )(*args)
    return logits, score1.reshape(B, n_nodes), score2.reshape(B, n_nodes)


# ------------------------------------ main ------------------------------------

if __name__ == "__main__":
    # small, module-consistent sizes
    B, N, T = 2, 16, 32          # batch, num_nodes (ROIs), time-series length
    DIM1, DIM2, DIM3 = 32, 32, 16
    KHID = 8                     # n_clustered_communities (pos-MLP hidden)
    NCLASS = 1
    RATIO = 0.5                  # bgnn_ratio
    K1 = ceil(RATIO * N)         # nodes kept after pool1
    K2 = ceil(RATIO * K1)        # nodes kept after pool2

    key = jax.random.PRNGKey(0)
    keys = jax.random.split(key, 12)

    # synthetic inputs: time series -> pearson corr (pos = one-hot ROI identity,
    # folded into parameter prep)
    ts = jax.random.normal(keys[0], (B, N, T), dtype=jnp.float32)
    ts_c = ts - jnp.mean(ts, axis=-1, keepdims=True)
    cov = jnp.einsum("bnt,bmt->bnm", ts_c, ts_c)
    std = jnp.sqrt(jnp.diagonal(cov, axis1=1, axis2=2))
    pearson = cov / (std[:, :, None] * std[:, None, :] + 1e-8)   # [B, N, N]

    def w(k, shape, scale=0.1):
        return scale * jax.random.normal(k, shape, dtype=jnp.float32)

    bn_eps = 1e-5
    params = {
        # conv1: pos-MLP  N -> KHID -> N*DIM1   (node-specific weight generator)
        # TODO(synk): MyNNConv pos-MLP biases / root-weight are not modeled.
        "conv1_w1": w(keys[1], (N, KHID)),
        "conv1_w2": w(keys[2], (KHID, N * DIM1)),
        "conv2_w1": w(keys[3], (N, KHID)),
        "conv2_w2": w(keys[4], (KHID, DIM1 * DIM2)),
        # TopK pooling projection weights
        "pool1_w": w(keys[5], (DIM1,)),
        "pool2_w": w(keys[6], (DIM2,)),
        # fc head: (DIM1+DIM2)*2 -> DIM2 -> DIM3 -> NCLASS, BN eval-mode folded
        "fc1_w": w(keys[7], (2 * (DIM1 + DIM2), DIM2)),
        "fc1_b": jnp.zeros((1, DIM2), jnp.float32),
        "bn1_g": jnp.ones((1, DIM2), jnp.float32) / jnp.sqrt(1.0 + bn_eps),
        "bn1_b": jnp.zeros((1, DIM2), jnp.float32),
        "fc2_w": w(keys[8], (DIM2, DIM3)),
        "fc2_b": jnp.zeros((1, DIM3), jnp.float32),
        "bn2_g": jnp.ones((1, DIM3), jnp.float32) / jnp.sqrt(1.0 + bn_eps),
        "bn2_b": jnp.zeros((1, DIM3), jnp.float32),
        "fc3_w": w(keys[9], (DIM3, NCLASS)),
        "fc3_b": jnp.zeros((1, NCLASS), jnp.float32),
    }

    prep = prepare_params(params, B)     # one-time prep, hoisted out of forward

    logits, score1, score2 = braingnn_forward(prep, pearson,
                                              n_nodes=N, k1=K1, k2=K2)
    allpools = (params["pool1_w"], params["pool2_w"])
    scores = (score1, score2)

    jax.block_until_ready(logits)
    jax.block_until_ready(score1)
    jax.block_until_ready(score2)

    assert logits.shape == (B, NCLASS)
    assert score1.shape == (B, N) and score2.shape == (B, N)
    assert bool(jnp.all(jnp.isfinite(logits)))
    assert bool(jnp.all(jnp.isfinite(score1))) and bool(jnp.all(jnp.isfinite(score2)))
    print("KERNEL_OK")
</pallas_src>

<mosaic_0001>
module attributes {stable_mosaic.version = 11 : i64} {
  func.func @braingnn_fused_kernel(%arg0: memref<32x16xf32, #tpu.memory_space<vmem>>, %arg1: memref<32x32xf32, #tpu.memory_space<vmem>>, %arg2: memref<32x128xf32, #tpu.memory_space<vmem>>, %arg3: memref<32x256xf32, #tpu.memory_space<vmem>>, %arg4: memref<16x128xf32, #tpu.memory_space<vmem>>, %arg5: memref<32x256xf32, #tpu.memory_space<vmem>>, %arg6: memref<128x32xf32, #tpu.memory_space<vmem>>, %arg7: memref<256x32xf32, #tpu.memory_space<vmem>>, %arg8: memref<1x32xf32, #tpu.memory_space<vmem>>, %arg9: memref<1x32xf32, #tpu.memory_space<vmem>>, %arg10: memref<128x32xf32, #tpu.memory_space<vmem>>, %arg11: memref<1x32xf32, #tpu.memory_space<vmem>>, %arg12: memref<1x32xf32, #tpu.memory_space<vmem>>, %arg13: memref<1x32xf32, #tpu.memory_space<vmem>>, %arg14: memref<32x16xf32, #tpu.memory_space<vmem>>, %arg15: memref<1x16xf32, #tpu.memory_space<vmem>>, %arg16: memref<1x16xf32, #tpu.memory_space<vmem>>, %arg17: memref<1x16xf32, #tpu.memory_space<vmem>>, %arg18: memref<16x1xf32, #tpu.memory_space<vmem>>, %arg19: memref<1x1xf32, #tpu.memory_space<vmem>>, %arg20: memref<32x1xf32, #tpu.memory_space<vmem>>, %arg21: memref<32x1xf32, #tpu.memory_space<vmem>>, %arg22: memref<2x1xf32, #tpu.memory_space<vmem>>, %arg23: memref<2x128xf32, #tpu.memory_space<vmem>>) attributes {dimension_semantics = [], scalar_prefetch = 0 : i64, scratch_operands = 1 : i64, tpu.core_type = #tpu.core_type<tc>} {
    %0 = tpu.iota {dimensions = array<i32: 0>} : vector<32x32xi32>
    %1 = tpu.iota {dimensions = array<i32: 1>} : vector<32x32xi32>
    %2 = arith.cmpi eq, %0, %1 : vector<32x32xi32>
    %c0 = arith.constant 0 : index
    %c0_0 = arith.constant 0 : index
    %3 = vector.load %arg1[%c0, %c0_0] : memref<32x32xf32, #tpu.memory_space<vmem>>, vector<32x32xf32>
    %cst = arith.constant -1.000000e+20 : f32
    %4 = vector.broadcast %cst : f32 to vector<32x32xf32>
    %5 = arith.cmpf ogt, %3, %4 : vector<32x32xf32>
    %cst_1 = arith.constant 0.000000e+00 : f32
    %6 = vector.broadcast %cst_1 : f32 to vector<32x32xf32>
    %7 = arith.maximumf %3, %6 : vector<32x32xf32>
    %c0_2 = arith.constant 0 : index
    %c0_3 = arith.constant 0 : index
    %8 = vector.load %arg0[%c0_2, %c0_3] : memref<32x16xf32, #tpu.memory_space<vmem>>, vector<32x16xf32>
    %c0_4 = arith.constant 0 : index
    %c0_5 = arith.constant 0 : index
    %9 = vector.load %arg4[%c0_4, %c0_5] : memref<16x128xf32, #tpu.memory_space<vmem>>, vector<16x128xf32>
    %c0_6 = arith.constant 0 : index
    %c0_7 = arith.constant 0 : index
    %10 = vector.load %arg2[%c0_6, %c0_7] : memref<32x128xf32, #tpu.memory_space<vmem>>, vector<32x128xf32>
    %c0_8 = arith.constant 0 : index
    %c0_9 = arith.constant 0 : index
    %11 = vector.load %arg6[%c0_8, %c0_9] : memref<128x32xf32, #tpu.memory_space<vmem>>, vector<128x32xf32>
    %cst_10 = arith.constant dense<0.000000e+00> : vector<32x128xf32>
    %12 = tpu.matmul %8, %9, %cst_10 {dimension_numbers = #tpu.dot_dimension_numbers<[1], [0], [0], [1], [0, 0, 1, 1], [], []>} : vector<32x16xf32>, vector<16x128xf32>, vector<32x128xf32> -> vector<32x128xf32>
    %13 = arith.mulf %12, %10 : vector<32x128xf32>
    %cst_11 = arith.constant dense<0.000000e+00> : vector<32x32xf32>
    %14 = tpu.matmul %13, %11, %cst_11 {dimension_numbers = #tpu.dot_dimension_numbers<[1], [0], [0], [1], [0, 0, 1, 1], [], []>} : vector<32x128xf32>, vector<128x32xf32>, vector<32x32xf32> -> vector<32x32xf32>
    %cst_12 = arith.constant dense<0xFF800000> : vector<32xf32>
    %15 = vector.multi_reduction <maximumf>, %3, %cst_12 [1] : vector<32x32xf32> to vector<32xf32>
    %16 = vector.shape_cast %15 : vector<32xf32> to vector<32x1xf32>
    %17 = vector.broadcast %16 : vector<32x1xf32> to vector<32x32xf32>
    %18 = arith.subf %3, %17 : vector<32x32xf32>
    %19 = math.exp %18 : vector<32x32xf32>
    %cst_13 = arith.constant dense<0.000000e+00> : vector<32xf32>
    %20 = vector.multi_reduction <add>, %19, %cst_13 [1] : vector<32x32xf32> to vector<32xf32>
    %21 = vector.shape_cast %20 : vector<32xf32> to vector<32x1xf32>
    %22 = tpu.reciprocal %21 {approx = true} : vector<32x1xf32> -> vector<32x1xf32>
    %23 = vector.broadcast %22 : vector<32x1xf32> to vector<32x32xf32>
    %24 = arith.mulf %19, %23 : vector<32x32xf32>
    %cst_14 = arith.constant dense<0.000000e+00> : vector<32x32xf32>
    %25 = tpu.matmul %24, %14, %cst_14 {dimension_numbers = #tpu.dot_dimension_numbers<[1], [0], [0], [1], [0, 0, 1, 1], [], []>} : vector<32x32xf32>, vector<32x32xf32>, vector<32x32xf32> -> vector<32x32xf32>
    %cst_15 = arith.constant 0.000000e+00 : f32
    %26 = vector.broadcast %cst_15 : f32 to vector<32x32xf32>
    %27 = arith.maximumf %25, %26 : vector<32x32xf32>
    %c0_16 = arith.constant 0 : index
    %c0_17 = arith.constant 0 : index
    %28 = vector.load %arg8[%c0_16, %c0_17] : memref<1x32xf32, #tpu.memory_space<vmem>>, vector<1x32xf32>
    %29 = tpu.transpose %27, [1, 0] : vector<32x32xf32> -> vector<32x32xf32>
    %cst_18 = arith.constant dense<0.000000e+00> : vector<1x32xf32>
    %30 = tpu.matmul %28, %29, %cst_18 {dimension_numbers = #tpu.dot_dimension_numbers<[1], [0], [0], [1], [0, 0, 1, 1], [], []>} : vector<1x32xf32>, vector<32x32xf32>, vector<1x32xf32> -> vector<1x32xf32>
    %cst_19 = arith.constant 0.000000e+00 : f32
    %31 = vector.shape_cast %30 : vector<1x32xf32> to vector<1x32xf32>
    %32 = vector.broadcast %31 : vector<1x32xf32> to vector<32x32xf32>
    %33 = vector.broadcast %cst_19 : f32 to vector<32x32xf32>
    %34 = arith.select %2, %32, %33 : vector<32x32xi1>, vector<32x32xf32>
    %cst_20 = arith.constant dense<0.000000e+00> : vector<32xf32>
    %35 = vector.multi_reduction <add>, %34, %cst_20 [1] : vector<32x32xf32> to vector<32xf32>
    %36 = vector.shape_cast %35 : vector<32xf32> to vector<32x1xf32>
    %37 = vector.broadcast %30 : vector<1x32xf32> to vector<32x32xf32>
    %38 = vector.broadcast %36 : vector<32x1xf32> to vector<32x32xf32>
    %39 = arith.cmpf ogt, %37, %38 : vector<32x32xf32>
    %40 = vector.broadcast %30 : vector<1x32xf32> to vector<32x32xf32>
    %41 = vector.broadcast %36 : vector<32x1xf32> to vector<32x32xf32>
    %42 = arith.cmpf oeq, %40, %41 : vector<32x32xf32>
    %43 = arith.cmpi slt, %1, %0 : vector<32x32xi32>
    %44 = arith.andi %42, %43 : vector<32x32xi1>
    %45 = arith.ori %39, %44 : vector<32x32xi1>
    %46 = arith.andi %45, %5 : vector<32x32xi1>
    %47 = arith.cmpi ne, %1, %0 : vector<32x32xi32>
    %48 = arith.andi %46, %47 : vector<32x32xi1>
    %49 = arith.extui %48 : vector<32x32xi1> to vector<32x32xi32>
    %50 = arith.sitofp %49 : vector<32x32xi32> to vector<32x32xf32>
    %cst_21 = arith.constant dense<0.000000e+00> : vector<32xf32>
    %51 = vector.multi_reduction <add>, %50, %cst_21 [1] : vector<32x32xf32> to vector<32xf32>
    %52 = vector.shape_cast %51 : vector<32xf32> to vector<32x1xf32>
    %cst_22 = arith.constant dense<0.000000e+00> : vector<32xf32>
    %53 = vector.multi_reduction <add>, %50, %cst_22 [0] : vector<32x32xf32> to vector<32xf32>
    %54 = vector.shape_cast %53 : vector<32xf32> to vector<1x32xf32>
    %cst_23 = arith.constant 8.000000e+00 : f32
    %55 = vector.broadcast %cst_23 : f32 to vector<32x1xf32>
    %56 = arith.cmpf olt, %52, %55 : vector<32x1xf32>
    %cst_24 = arith.constant 8.000000e+00 : f32
    %57 = vector.broadcast %cst_24 : f32 to vector<1x32xf32>
    %58 = arith.cmpf oge, %54, %57 : vector<1x32xf32>
    %59 = arith.negf %36 : vector<32x1xf32>
    %60 = math.exp %59 : vector<32x1xf32>
    %cst_25 = arith.constant 1.000000e+00 : f32
    %61 = vector.broadcast %cst_25 : f32 to vector<32x1xf32>
    %62 = arith.addf %61, %60 : vector<32x1xf32>
    %63 = arith.divf %61, %62 : vector<32x1xf32>
    %64 = vector.broadcast %63 : vector<32x1xf32> to vector<32x32xf32>
    %65 = arith.mulf %27, %64 : vector<32x32xf32>
    %cst_26 = arith.constant 0.000000e+00 : f32
    %66 = vector.shape_cast %56 : vector<32x1xi1> to vector<32x1xi1>
    %67 = vector.broadcast %66 : vector<32x1xi1> to vector<32x32xi1>
    %68 = vector.broadcast %cst_26 : f32 to vector<32x32xf32>
    %69 = arith.select %67, %7, %68 : vector<32x32xi1>, vector<32x32xf32>
    %cst_27 = arith.constant dense<0.000000e+00> : vector<32x32xf32>
    %70 = tpu.matmul %69, %69, %cst_27 {dimension_numbers = #tpu.dot_dimension_numbers<[1], [0], [0], [1], [0, 0, 1, 1], [], []>} : vector<32x32xf32>, vector<32x32xf32>, vector<32x32xf32> -> vector<32x32xf32>
    %71 = vector.broadcast %58 : vector<1x32xi1> to vector<32x32xi1>
    %72 = arith.andi %5, %71 : vector<32x32xi1>
    %cst_28 = arith.constant -1.000000e+30 : f32
    %73 = vector.broadcast %cst_28 : f32 to vector<32x32xf32>
    %74 = arith.select %72, %70, %73 : vector<32x32xi1>, vector<32x32xf32>
    %c0_29 = arith.constant 0 : index
    %c0_30 = arith.constant 0 : index
    %75 = vector.load %arg5[%c0_29, %c0_30] : memref<32x256xf32, #tpu.memory_space<vmem>>, vector<32x256xf32>
    %c0_31 = arith.constant 0 : index
    %c0_32 = arith.constant 0 : index
    %76 = vector.load %arg3[%c0_31, %c0_32] : memref<32x256xf32, #tpu.memory_space<vmem>>, vector<32x256xf32>
    %c0_33 = arith.constant 0 : index
    %c0_34 = arith.constant 0 : index
    %77 = vector.load %arg7[%c0_33, %c0_34] : memref<256x32xf32, #tpu.memory_space<vmem>>, vector<256x32xf32>
    %cst_35 = arith.constant dense<0.000000e+00> : vector<32x256xf32>
    %78 = tpu.matmul %65, %75, %cst_35 {dimension_numbers = #tpu.dot_dimension_numbers<[1], [0], [0], [1], [0, 0, 1, 1], [], []>} : vector<32x32xf32>, vector<32x256xf32>, vector<32x256xf32> -> vector<32x256xf32>
    %79 = arith.mulf %78, %76 : vector<32x256xf32>
    %cst_36 = arith.constant dense<0.000000e+00> : vector<32x32xf32>
    %80 = tpu.matmul %79, %77, %cst_36 {dimension_numbers = #tpu.dot_dimension_numbers<[1], [0], [0], [1], [0, 0, 1, 1], [], []>} : vector<32x256xf32>, vector<256x32xf32>, vector<32x32xf32> -> vector<32x32xf32>
    %cst_37 = arith.constant dense<0xFF800000> : vector<32xf32>
    %81 = vector.multi_reduction <maximumf>, %74, %cst_37 [1] : vector<32x32xf32> to vector<32xf32>
    %82 = vector.shape_cast %81 : vector<32xf32> to vector<32x1xf32>
    %83 = vector.broadcast %82 : vector<32x1xf32> to vector<32x32xf32>
    %84 = arith.subf %74, %83 : vector<32x32xf32>
    %85 = math.exp %84 : vector<32x32xf32>
    %cst_38 = arith.constant dense<0.000000e+00> : vector<32xf32>
    %86 = vector.multi_reduction <add>, %85, %cst_38 [1] : vector<32x32xf32> to vector<32xf32>
    %87 = vector.shape_cast %86 : vector<32xf32> to vector<32x1xf32>
    %88 = tpu.reciprocal %87 {approx = true} : vector<32x1xf32> -> vector<32x1xf32>
    %89 = vector.broadcast %88 : vector<32x1xf32> to vector<32x32xf32>
    %90 = arith.mulf %85, %89 : vector<32x32xf32>
    %cst_39 = arith.constant dense<0.000000e+00> : vector<32x32xf32>
    %91 = tpu.matmul %90, %80, %cst_39 {dimension_numbers = #tpu.dot_dimension_numbers<[1], [0], [0], [1], [0, 0, 1, 1], [], []>} : vector<32x32xf32>, vector<32x32xf32>, vector<32x32xf32> -> vector<32x32xf32>
    %cst_40 = arith.constant 0.000000e+00 : f32
    %92 = vector.broadcast %cst_40 : f32 to vector<32x32xf32>
    %93 = arith.maximumf %91, %92 : vector<32x32xf32>
    %c0_41 = arith.constant 0 : index
    %c0_42 = arith.constant 0 : index
    %94 = vector.load %arg9[%c0_41, %c0_42] : memref<1x32xf32, #tpu.memory_space<vmem>>, vector<1x32xf32>
    %95 = tpu.transpose %93, [1, 0] : vector<32x32xf32> -> vector<32x32xf32>
    %cst_43 = arith.constant dense<0.000000e+00> : vector<1x32xf32>
    %96 = tpu.matmul %94, %95, %cst_43 {dimension_numbers = #tpu.dot_dimension_numbers<[1], [0], [0], [1], [0, 0, 1, 1], [], []>} : vector<1x32xf32>, vector<32x32xf32>, vector<1x32xf32> -> vector<1x32xf32>
    %cst_44 = arith.constant 0.000000e+00 : f32
    %97 = vector.shape_cast %96 : vector<1x32xf32> to vector<1x32xf32>
    %98 = vector.broadcast %97 : vector<1x32xf32> to vector<32x32xf32>
    %99 = vector.broadcast %cst_44 : f32 to vector<32x32xf32>
    %100 = arith.select %2, %98, %99 : vector<32x32xi1>, vector<32x32xf32>
    %cst_45 = arith.constant dense<0.000000e+00> : vector<32xf32>
    %101 = vector.multi_reduction <add>, %100, %cst_45 [1] : vector<32x32xf32> to vector<32xf32>
    %102 = vector.shape_cast %101 : vector<32xf32> to vector<32x1xf32>
    %103 = vector.broadcast %96 : vector<1x32xf32> to vector<32x32xf32>
    %104 = vector.broadcast %102 : vector<32x1xf32> to vector<32x32xf32>
    %105 = arith.cmpf ogt, %103, %104 : vector<32x32xf32>
    %106 = vector.broadcast %96 : vector<1x32xf32> to vector<32x32xf32>
    %107 = vector.broadcast %102 : vector<32x1xf32> to vector<32x32xf32>
    %108 = arith.cmpf oeq, %106, %107 : vector<32x32xf32>
    %109 = arith.cmpi slt, %1, %0 : vector<32x32xi32>
    %110 = arith.andi %108, %109 : vector<32x32xi1>
    %111 = arith.ori %105, %110 : vector<32x32xi1>
    %112 = arith.andi %111, %5 : vector<32x32xi1>
    %113 = arith.cmpi ne, %1, %0 : vector<32x32xi32>
    %114 = arith.andi %112, %113 : vector<32x32xi1>
    %115 = vector.broadcast %58 : vector<1x32xi1> to vector<32x32xi1>
    %116 = arith.andi %114, %115 : vector<32x32xi1>
    %117 = vector.broadcast %56 : vector<32x1xi1> to vector<32x32xi1>
    %118 = arith.andi %116, %117 : vector<32x32xi1>
    %119 = arith.extui %118 : vector<32x32xi1> to vector<32x32xi32>
    %120 = arith.sitofp %119 : vector<32x32xi32> to vector<32x32xf32>
    %cst_46 = arith.constant dense<0.000000e+00> : vector<32xf32>
    %121 = vector.multi_reduction <add>, %120, %cst_46 [1] : vector<32x32xf32> to vector<32xf32>
    %122 = vector.shape_cast %121 : vector<32xf32> to vector<32x1xf32>
    %cst_47 = arith.constant 4.000000e+00 : f32
    %123 = vector.broadcast %cst_47 : f32 to vector<32x1xf32>
    %124 = arith.cmpf olt, %122, %123 : vector<32x1xf32>
    %125 = arith.andi %56, %124 : vector<32x1xi1>
    %126 = arith.negf %102 : vector<32x1xf32>
    %127 = math.exp %126 : vector<32x1xf32>
    %cst_48 = arith.constant 1.000000e+00 : f32
    %128 = vector.broadcast %cst_48 : f32 to vector<32x1xf32>
    %129 = arith.addf %128, %127 : vector<32x1xf32>
    %130 = arith.divf %128, %129 : vector<32x1xf32>
    %131 = vector.broadcast %130 : vector<32x1xf32> to vector<32x32xf32>
    %132 = arith.mulf %93, %131 : vector<32x32xf32>
    %cst_49 = arith.constant -1.000000e+30 : f32
    %133 = vector.shape_cast %56 : vector<32x1xi1> to vector<32x1xi1>
    %134 = vector.broadcast %133 : vector<32x1xi1> to vector<32x32xi1>
    %135 = vector.broadcast %cst_49 : f32 to vector<32x32xf32>
    %136 = arith.select %134, %65, %135 : vector<32x32xi1>, vector<32x32xf32>
    %cst_50 = arith.constant 0.000000e+00 : f32
    %137 = vector.shape_cast %56 : vector<32x1xi1> to vector<32x1xi1>
    %138 = vector.broadcast %137 : vector<32x1xi1> to vector<32x32xi1>
    %139 = vector.broadcast %cst_50 : f32 to vector<32x32xf32>
    %140 = arith.select %138, %65, %139 : vector<32x32xi1>, vector<32x32xf32>
    %cst_51 = arith.constant -1.000000e+30 : f32
    %141 = vector.shape_cast %125 : vector<32x1xi1> to vector<32x1xi1>
    %142 = vector.broadcast %141 : vector<32x1xi1> to vector<32x32xi1>
    %143 = vector.broadcast %cst_51 : f32 to vector<32x32xf32>
    %144 = arith.select %142, %132, %143 : vector<32x32xi1>, vector<32x32xf32>
    %cst_52 = arith.constant 0.000000e+00 : f32
    %145 = vector.shape_cast %125 : vector<32x1xi1> to vector<32x1xi1>
    %146 = vector.broadcast %145 : vector<32x1xi1> to vector<32x32xi1>
    %147 = vector.broadcast %cst_52 : f32 to vector<32x32xf32>
    %148 = arith.select %146, %132, %147 : vector<32x32xi1>, vector<32x32xf32>
    %149 = vector.extract_strided_slice %136 {offsets = [0, 0], sizes = [16, 32], strides = [1, 1]} : vector<32x32xf32> to vector<16x32xf32>
    %cst_53 = arith.constant dense<0xFF800000> : vector<32xf32>
    %150 = vector.multi_reduction <maximumf>, %149, %cst_53 [0] : vector<16x32xf32> to vector<32xf32>
    %151 = vector.shape_cast %150 : vector<32xf32> to vector<1x32xf32>
    %152 = vector.extract_strided_slice %140 {offsets = [0, 0], sizes = [16, 32], strides = [1, 1]} : vector<32x32xf32> to vector<16x32xf32>
    %cst_54 = arith.constant dense<0.000000e+00> : vector<32xf32>
    %153 = vector.multi_reduction <add>, %152, %cst_54 [0] : vector<16x32xf32> to vector<32xf32>
    %154 = vector.shape_cast %153 : vector<32xf32> to vector<1x32xf32>
    %cst_55 = arith.constant 1.250000e-01 : f32
    %155 = vector.broadcast %cst_55 : f32 to vector<1x32xf32>
    %156 = arith.mulf %154, %155 : vector<1x32xf32>
    %157 = vector.extract_strided_slice %144 {offsets = [0, 0], sizes = [16, 32], strides = [1, 1]} : vector<32x32xf32> to vector<16x32xf32>
    %cst_56 = arith.constant dense<0xFF800000> : vector<32xf32>
    %158 = vector.multi_reduction <maximumf>, %157, %cst_56 [0] : vector<16x32xf32> to vector<32xf32>
    %159 = vector.shape_cast %158 : vector<32xf32> to vector<1x32xf32>
    %160 = vector.extract_strided_slice %148 {offsets = [0, 0], sizes = [16, 32], strides = [1, 1]} : vector<32x32xf32> to vector<16x32xf32>
    %cst_57 = arith.constant dense<0.000000e+00> : vector<32xf32>
    %161 = vector.multi_reduction <add>, %160, %cst_57 [0] : vector<16x32xf32> to vector<32xf32>
    %162 = vector.shape_cast %161 : vector<32xf32> to vector<1x32xf32>
    %cst_58 = arith.constant 2.500000e-01 : f32
    %163 = vector.broadcast %cst_58 : f32 to vector<1x32xf32>
    %164 = arith.mulf %162, %163 : vector<1x32xf32>
    %c0_59 = arith.constant 0 : index
    %c0_60 = arith.constant 0 : index
    %165 = vector.load %arg23[%c0_59, %c0_60] : memref<2x128xf32, #tpu.memory_space<vmem>>, vector<1x32xf32>
    tpu.vector_store %arg23[%c0_59, %c0_60], %151 {strides = array<i32>} : memref<2x128xf32, #tpu.memory_space<vmem>>, vector<1x32xf32>,
    %c0_61 = arith.constant 0 : index
    %c32 = arith.constant 32 : index
    %166 = vector.load %arg23[%c0_61, %c32] : memref<2x128xf32, #tpu.memory_space<vmem>>, vector<1x32xf32>
    tpu.vector_store %arg23[%c0_61, %c32], %156 {strides = array<i32>} : memref<2x128xf32, #tpu.memory_space<vmem>>, vector<1x32xf32>,
    %c0_62 = arith.constant 0 : index
    %c64 = arith.constant 64 : index
    %167 = vector.load %arg23[%c0_62, %c64] : memref<2x128xf32, #tpu.memory_space<vmem>>, vector<1x32xf32>
    tpu.vector_store %arg23[%c0_62, %c64], %159 {strides = array<i32>} : memref<2x128xf32, #tpu.memory_space<vmem>>, vector<1x32xf32>,
    %c0_63 = arith.constant 0 : index
    %c96 = arith.constant 96 : index
    %168 = vector.load %arg23[%c0_63, %c96] : memref<2x128xf32, #tpu.memory_space<vmem>>, vector<1x32xf32>
    tpu.vector_store %arg23[%c0_63, %c96], %164 {strides = array<i32>} : memref<2x128xf32, #tpu.memory_space<vmem>>, vector<1x32xf32>,
    %169 = vector.extract_strided_slice %136 {offsets = [16, 0], sizes = [16, 32], strides = [1, 1]} : vector<32x32xf32> to vector<16x32xf32>
    %cst_64 = arith.constant dense<0xFF800000> : vector<32xf32>
    %170 = vector.multi_reduction <maximumf>, %169, %cst_64 [0] : vector<16x32xf32> to vector<32xf32>
    %171 = vector.shape_cast %170 : vector<32xf32> to vector<1x32xf32>
    %172 = vector.extract_strided_slice %140 {offsets = [16, 0], sizes = [16, 32], strides = [1, 1]} : vector<32x32xf32> to vector<16x32xf32>
    %cst_65 = arith.constant dense<0.000000e+00> : vector<32xf32>
    %173 = vector.multi_reduction <add>, %172, %cst_65 [0] : vector<16x32xf32> to vector<32xf32>
    %174 = vector.shape_cast %173 : vector<32xf32> to vector<1x32xf32>
    %cst_66 = arith.constant 1.250000e-01 : f32
    %175 = vector.broadcast %cst_66 : f32 to vector<1x32xf32>
    %176 = arith.mulf %174, %175 : vector<1x32xf32>
    %177 = vector.extract_strided_slice %144 {offsets = [16, 0], sizes = [16, 32], strides = [1, 1]} : vector<32x32xf32> to vector<16x32xf32>
    %cst_67 = arith.constant dense<0xFF800000> : vector<32xf32>
    %178 = vector.multi_reduction <maximumf>, %177, %cst_67 [0] : vector<16x32xf32> to vector<32xf32>
    %179 = vector.shape_cast %178 : vector<32xf32> to vector<1x32xf32>
    %180 = vector.extract_strided_slice %148 {offsets = [16, 0], sizes = [16, 32], strides = [1, 1]} : vector<32x32xf32> to vector<16x32xf32>
    %cst_68 = arith.constant dense<0.000000e+00> : vector<32xf32>
    %181 = vector.multi_reduction <add>, %180, %cst_68 [0] : vector<16x32xf32> to vector<32xf32>
    %182 = vector.shape_cast %181 : vector<32xf32> to vector<1x32xf32>
    %cst_69 = arith.constant 2.500000e-01 : f32
    %183 = vector.broadcast %cst_69 : f32 to vector<1x32xf32>
    %184 = arith.mulf %182, %183 : vector<1x32xf32>
    %c1 = arith.constant 1 : index
    %c0_70 = arith.constant 0 : index
    %185 = vector.load %arg23[%c1, %c0_70] : memref<2x128xf32, #tpu.memory_space<vmem>>, vector<1x32xf32>
    tpu.vector_store %arg23[%c1, %c0_70], %171 {strides = array<i32>} : memref<2x128xf32, #tpu.memory_space<vmem>>, vector<1x32xf32>,
    %c1_71 = arith.constant 1 : index
    %c32_72 = arith.constant 32 : index
    %186 = vector.load %arg23[%c1_71, %c32_72] : memref<2x128xf32, #tpu.memory_space<vmem>>, vector<1x32xf32>
    tpu.vector_store %arg23[%c1_71, %c32_72], %176 {strides = array<i32>} : memref<2x128xf32, #tpu.memory_space<vmem>>, vector<1x32xf32>,
    %c1_73 = arith.constant 1 : index
    %c64_74 = arith.constant 64 : index
    %187 = vector.load %arg23[%c1_73, %c64_74] : memref<2x128xf32, #tpu.memory_space<vmem>>, vector<1x32xf32>
    tpu.vector_store %arg23[%c1_73, %c64_74], %179 {strides = array<i32>} : memref<2x128xf32, #tpu.memory_space<vmem>>, vector<1x32xf32>,
    %c1_75 = arith.constant 1 : index
    %c96_76 = arith.constant 96 : index
    %188 = vector.load %arg23[%c1_75, %c96_76] : memref<2x128xf32, #tpu.memory_space<vmem>>, vector<1x32xf32>
    tpu.vector_store %arg23[%c1_75, %c96_76], %184 {strides = array<i32>} : memref<2x128xf32, #tpu.memory_space<vmem>>, vector<1x32xf32>,
    %c0_77 = arith.constant 0 : index
    %c0_78 = arith.constant 0 : index
    %189 = vector.load %arg23[%c0_77, %c0_78] : memref<2x128xf32, #tpu.memory_space<vmem>>, vector<2x128xf32>
    %c0_79 = arith.constant 0 : index
    %c0_80 = arith.constant 0 : index
    %190 = vector.load %arg10[%c0_79, %c0_80] : memref<128x32xf32, #tpu.memory_space<vmem>>, vector<128x32xf32>
    %cst_81 = arith.constant dense<0.000000e+00> : vector<2x32xf32>
    %191 = tpu.matmul %189, %190, %cst_81 {dimension_numbers = #tpu.dot_dimension_numbers<[1], [0], [0], [1], [0, 0, 1, 1], [], []>} : vector<2x128xf32>, vector<128x32xf32>, vector<2x32xf32> -> vector<2x32xf32>
    %c0_82 = arith.constant 0 : index
    %c0_83 = arith.constant 0 : index
    %192 = vector.load %arg11[%c0_82, %c0_83] : memref<1x32xf32, #tpu.memory_space<vmem>>, vector<1x32xf32>
    %193 = vector.broadcast %192 : vector<1x32xf32> to vector<2x32xf32>
    %194 = arith.addf %191, %193 : vector<2x32xf32>
    %cst_84 = arith.constant 0.000000e+00 : f32
    %195 = vector.broadcast %cst_84 : f32 to vector<2x32xf32>
    %196 = arith.maximumf %194, %195 : vector<2x32xf32>
    %c0_85 = arith.constant 0 : index
    %c0_86 = arith.constant 0 : index
    %197 = vector.load %arg12[%c0_85, %c0_86] : memref<1x32xf32, #tpu.memory_space<vmem>>, vector<1x32xf32>
    %198 = vector.broadcast %197 : vector<1x32xf32> to vector<2x32xf32>
    %199 = arith.mulf %196, %198 : vector<2x32xf32>
    %c0_87 = arith.constant 0 : index
    %c0_88 = arith.constant 0 : index
    %200 = vector.load %arg13[%c0_87, %c0_88] : memref<1x32xf32, #tpu.memory_space<vmem>>, vector<1x32xf32>
    %201 = vector.broadcast %200 : vector<1x32xf32> to vector<2x32xf32>
    %202 = arith.addf %199, %201 : vector<2x32xf32>
    %c0_89 = arith.constant 0 : index
    %c0_90 = arith.constant 0 : index
    %203 = vector.load %arg14[%c0_89, %c0_90] : memref<32x16xf32, #tpu.memory_space<vmem>>, vector<32x16xf32>
    %cst_91 = arith.constant dense<0.000000e+00> : vector<2x16xf32>
    %204 = tpu.matmul %202, %203, %cst_91 {dimension_numbers = #tpu.dot_dimension_numbers<[1], [0], [0], [1], [0, 0, 1, 1], [], []>} : vector<2x32xf32>, vector<32x16xf32>, vector<2x16xf32> -> vector<2x16xf32>
    %c0_92 = arith.constant 0 : index
    %c0_93 = arith.constant 0 : index
    %205 = vector.load %arg15[%c0_92, %c0_93] : memref<1x16xf32, #tpu.memory_space<vmem>>, vector<1x16xf32>
    %206 = vector.broadcast %205 : vector<1x16xf32> to vector<2x16xf32>
    %207 = arith.addf %204, %206 : vector<2x16xf32>
    %cst_94 = arith.constant 0.000000e+00 : f32
    %208 = vector.broadcast %cst_94 : f32 to vector<2x16xf32>
    %209 = arith.maximumf %207, %208 : vector<2x16xf32>
    %c0_95 = arith.constant 0 : index
    %c0_96 = arith.constant 0 : index
    %210 = vector.load %arg16[%c0_95, %c0_96] : memref<1x16xf32, #tpu.memory_space<vmem>>, vector<1x16xf32>
    %211 = vector.broadcast %210 : vector<1x16xf32> to vector<2x16xf32>
    %212 = arith.mulf %209, %211 : vector<2x16xf32>
    %c0_97 = arith.constant 0 : index
    %c0_98 = arith.constant 0 : index
    %213 = vector.load %arg17[%c0_97, %c0_98] : memref<1x16xf32, #tpu.memory_space<vmem>>, vector<1x16xf32>
    %214 = vector.broadcast %213 : vector<1x16xf32> to vector<2x16xf32>
    %215 = arith.addf %212, %214 : vector<2x16xf32>
    %c0_99 = arith.constant 0 : index
    %c0_100 = arith.constant 0 : index
    %216 = vector.load %arg18[%c0_99, %c0_100] : memref<16x1xf32, #tpu.memory_space<vmem>>, vector<16x1xf32>
    %cst_101 = arith.constant dense<0.000000e+00> : vector<2x1xf32>
    %217 = tpu.matmul %215, %216, %cst_101 {dimension_numbers = #tpu.dot_dimension_numbers<[1], [0], [0], [1], [0, 0, 1, 1], [], []>} : vector<2x16xf32>, vector<16x1xf32>, vector<2x1xf32> -> vector<2x1xf32>
    %c0_102 = arith.constant 0 : index
    %c0_103 = arith.constant 0 : index
    %218 = vector.load %arg19[%c0_102, %c0_103] : memref<1x1xf32, #tpu.memory_space<vmem>>, vector<1x1xf32>
    %219 = vector.broadcast %218 : vector<1x1xf32> to vector<2x1xf32>
    %220 = arith.addf %217, %219 : vector<2x1xf32>
    %c0_104 = arith.constant 0 : index
    %c0_105 = arith.constant 0 : index
    %221 = vector.load %arg22[%c0_104, %c0_105] : memref<2x1xf32, #tpu.memory_space<vmem>>, vector<2x1xf32>
    tpu.vector_store %arg22[%c0_104, %c0_105], %220 {strides = array<i32>} : memref<2x1xf32, #tpu.memory_space<vmem>>, vector<2x1xf32>,
    %c0_106 = arith.constant 0 : index
    %c0_107 = arith.constant 0 : index
    %222 = vector.load %arg20[%c0_106, %c0_107] : memref<32x1xf32, #tpu.memory_space<vmem>>, vector<32x1xf32>
    tpu.vector_store %arg20[%c0_106, %c0_107], %63 {strides = array<i32>} : memref<32x1xf32, #tpu.memory_space<vmem>>, vector<32x1xf32>,
    %cst_108 = arith.constant 0.000000e+00 : f32
    %223 = vector.broadcast %cst_108 : f32 to vector<32x1xf32>
    %224 = arith.select %56, %130, %223 : vector<32x1xi1>, vector<32x1xf32>
    %c0_109 = arith.constant 0 : index
    %c0_110 = arith.constant 0 : index
    %225 = vector.load %arg21[%c0_109, %c0_110] : memref<32x1xf32, #tpu.memory_space<vmem>>, vector<32x1xf32>
    tpu.vector_store %arg21[%c0_109, %c0_110], %224 {strides = array<i32>} : memref<32x1xf32, #tpu.memory_space<vmem>>, vector<32x1xf32>,
    return
  }
}

</mosaic_0001>

<bundles_post_ra>
// kernel: braingnn_forward.1
= control target key start
LH: loop header
LB: loop body
LE: loop exit
PB: predicated region body
PF: predicated region fallthrough
CT: control target
= control target key end

     0   :  { %vm306_vm0 = vcmask 261120   ;;  %vm3283_vm1 = vcmask 130048   ;;  %vm3295_vm2 = vmmov 0   ;;  %s3254_s4 = inlined_call_operand.vmem [shape: f32[16,128], index: 4, kind: input, shape index: {}]   ;;  %s3255_s1 = inlined_call_operand.vmem [shape: f32[32,32], index: 1, kind: input, shape index: {}]   ;;  %s3256_s0 = inlined_call_operand.vmem [shape: f32[32,16], index: 0, kind: input, shape index: {}]   ;;  %s3257_s6 = inlined_call_operand.vmem [shape: f32[128,32], index: 6, kind: input, shape index: {}]   ;;  %s3258_s2 = inlined_call_operand.vmem [shape: f32[32,128], index: 2, kind: input, shape index: {}]   ;;  %s3259_s8 = inlined_call_operand.vmem [shape: f32[1,32], index: 8, kind: input, shape index: {}]   ;;  %s3260_s5 = inlined_call_operand.vmem [shape: f32[32,256], index: 5, kind: input, shape index: {}]   ;;  %s3261_s20 = inlined_call_operand.vmem [shape: f32[32,1], index: 20, kind: output, shape index: {0}]   ;;  %s3262_s7 = inlined_call_operand.vmem [shape: f32[256,32], index: 7, kind: input, shape index: {}]   ;;  %s3263_s3 = inlined_call_operand.vmem [shape: f32[32,256], index: 3, kind: input, shape index: {}]   ;;  %s3264_s9 = inlined_call_operand.vmem [shape: f32[1,32], index: 9, kind: input, shape index: {}]   ;;  %s3265_s21 = inlined_call_operand.vmem [shape: f32[32,1], index: 21, kind: output, shape index: {1}]   ;;  %s3266_s10 = inlined_call_operand.vmem [shape: f32[128,32], index: 10, kind: input, shape index: {}]   ;;  %s3267_s14 = inlined_call_operand.vmem [shape: f32[32,16], index: 14, kind: input, shape index: {}]   ;;  %s3268_s11 = inlined_call_operand.vmem [shape: f32[1,32], index: 11, kind: input, shape index: {}]   ;;  %s3269_s12 = inlined_call_operand.vmem [shape: f32[1,32], index: 12, kind: input, shape index: {}]   ;;  %s3270_s13 = inlined_call_operand.vmem [shape: f32[1,32], index: 13, kind: input, shape index: {}]   ;;  %s3271_s18 = inlined_call_operand.vmem [shape: f32[16,1], index: 18, kind: input, shape index: {}]   ;;  %s3272_s19 = inlined_call_operand.<no memory space> [shape: f32[1,1], index: 19, kind: input, shape index: {}]   ;;  %s3273_s15 = inlined_call_operand.vmem [shape: f32[1,16], index: 15, kind: input, shape index: {}]   ;;  %s3274_s16 = inlined_call_operand.vmem [shape: f32[1,16], index: 16, kind: input, shape index: {}]   ;;  %s3275_s17 = inlined_call_operand.vmem [shape: f32[1,16], index: 17, kind: input, shape index: {}]   ;;  %s3276_s22 = inlined_call_operand.vmem [shape: f32[2,1], index: 22, kind: output, shape index: {2}]  }
   0x1   :  { %3305 = sst [smem:[#allocation4_spill]] %s3254_s4 }
   0x2   :  { %3306 = sst [smem:[#allocation5_spill]] %s3255_s1 }
   0x3   :  { %3307 = sst [smem:[#allocation6_spill]] %s3256_s0 }
   0x4   :  { %3308 = sst [smem:[#allocation7_spill]] %s3257_s6 }
   0x5   :  { %3309 = sst [smem:[#allocation8_spill]] %s3258_s2 }
   0x6   :  { %3310 = sst [smem:[#allocation9_spill]] %s3259_s8 }
   0x7   :  { %3311 = sst [smem:[#allocation10_spill]] %s3260_s5 }
   0x8   :  { %s3312_s29 = sld [smem:[#allocation4_spill]] }
   0x9   :  { %s3313_s4 = sld [smem:[#allocation5_spill]] }
   0xa   :  { %s3314_s5 = sld [smem:[#allocation6_spill]] }
   0xb   :  { %s3315_s25 = sld [smem:[#allocation7_spill]] }
   0xc   :  { %s3316_s6 = sld [smem:[#allocation8_spill]] }
   0xd   :  { %s3317_s24 = sld [smem:[#allocation9_spill]] }
   0xe   :  { %v98_v0 = vld [vmem:[%s3312_s29 + $0x8] sm:$0xff]  ;;  %v97_v2 = vld [vmem:[%s3312_s29] sm:$0xff]  ;;  %s3318_s0 = sld [smem:[#allocation10_spill]]  ;;  %s2234_s29 = smov 64  }
   0xf   :  { %v2357_v1 = vld [vmem:[%s3313_s4] sm:$0xff]  ;;  %1997 = vmatprep.subr.mxu0 %v98_v0  ;;  %v2370_v5 = vld [vmem:[%s3313_s4 + $0x10] sm:$0xff]  ;;  %v2380_v8 = vld [vmem:[%s3313_s4 + $0x8] sm:$0xff] }
  0x10   :  { %v307_v3 = vsel %vm306_vm0, %v2357_v1, -inf  ;;  %v93_v4 = vld [vmem:[%s3314_s5] sm:$0xff]  ;;  %1998 = vmatpush3.msra.mxu0 %v98_v0  ;;  %v94_v6 = vld [vmem:[%s3314_s5 + $0x8] sm:$0xff]  ;;  %v313_v7 = vsel %vm306_vm0, %v2370_v5, -inf  ;;  %v310_v9 = vsel %vm306_vm0, %v2380_v8, -inf  ;;  %v95_v10 = vld [vmem:[%s3314_s5 + $0x10] sm:$0xff] }
  0x11   :  { %308 = vmax.xlane.f32.xlu0 %v307_v3  ;;  %1999 = vmatprep.subr.mxu0 %v97_v2  ;;  %v2391_v11 = vld [vmem:[%s3313_s4 + $0x18] sm:$0xff]  ;;  %v117_v15 = vld [vmem:[%s3315_s25 + $0x70] sm:$0xff]  ;;  %v116_v16 = vld [vmem:[%s3315_s25 + $0x68] sm:$0xff]  ;;  %s2233_s4 = smov 32  }
  0x12   :  { %2001 = vmatprep.mubr.msk.f32.mxu0 %vm3283_vm1, %v93_v4  ;;  %2000 = vmatpush3.msra.mxu0 %v97_v2  ;;  %v316_v12 = vsel %vm306_vm0, %v2391_v11, -inf  ;;  %v96_v13 = vld [vmem:[%s3314_s5 + $0x18] sm:$0xff]  ;;  %v115_v17 = vld [vmem:[%s3315_s25 + $0x60] sm:$0xff]  ;;  %v113_v19 = vld [vmem:[%s3315_s25 + $0x50] sm:$0xff]  ;;  %vm3297_vm13 = vcmp.gt.f32.partialorder %v2391_v11, -1e+20 }
  0x13   :  { %314 = vmax.xlane.f32.xlu1 %v313_v7  ;;  %2002 = vmatmul.mubr.msk.f32.vlgmr.msra.gmra.mxu0 %vm3283_vm1, %v94_v6  ;;  %v118_v14 = vld [vmem:[%s3315_s25 + $0x78] sm:$0xff]  ;;  %v112_v20 = vld [vmem:[%s3315_s25 + $0x48] sm:$0xff]  ;;  %v111_v21 = vld [vmem:[%s3315_s25 + $0x40] sm:$0xff] }
  0x14   :  { %2004 = vmatprep.mubr.msk.f32.mxu0 %vm3283_vm1, %v95_v10  ;;  %2007 = vmatprep.subr.mxu1 %v118_v14  ;;  %v114_v18 = vld [vmem:[%s3315_s25 + $0x58] sm:$0xff]  ;;  %v109_v23 = vld [vmem:[%s3315_s25 + $0x30] sm:$0xff]  ;;  %v108_v24 = vld [vmem:[%s3315_s25 + $0x28] sm:$0xff] }
  0x15   :  { %311 = vmax.xlane.f32.xlu0 %v310_v9  ;;  %2008 = vmatpush3.msra.mxu1 %v118_v14  ;;  %v110_v22 = vld [vmem:[%s3315_s25 + $0x38] sm:$0xff]  ;;  %v107_v25 = vld [vmem:[%s3315_s25 + $0x20] sm:$0xff]  ;;  %v105_v27 = vld [vmem:[%s3315_s25 + $0x10] sm:$0xff] }
  0x16   :  { %2009 = vmatprep.subr.mxu1 %v117_v15  ;;  %v106_v26 = vld [vmem:[%s3315_s25 + $0x18] sm:$0xff]  ;;  %v104_v28 = vld [vmem:[%s3315_s25 + $0x8] sm:$0xff]  ;;  %v103_v29 = vld [vmem:[%s3315_s25] sm:$0xff] }
  0x17   :  { %317 = vmax.xlane.f32.xlu1 %v316_v12  ;;  %2005 = vmatmul.mubr.msk.f32.gmra.mxu0 %vm3283_vm1, %v96_v13  ;;  %v99_v51 = vld [vmem:[%s3316_s6] sm:$0xff]  ;;  %v100_v52 = vld [vmem:[%s3316_s6 + $0x8] sm:$0xff]  ;;  %v101_v57 = vld [vmem:[%s3316_s6 + $0x10] sm:$0xff] }
  0x18   :  { %2010 = vmatpush3.msra.mxu1 %v117_v15  ;;  %v102_v58 = vld [vmem:[%s3316_s6 + $0x18] sm:$0xff] }
  0x19   :  { %2011 = vmatprep.subr.mxu1 %v116_v16 }
  0x1a   :  { %2012 = vmatpush3.msra.mxu1 %v116_v16 }
  0x1b   :  { %2013 = vmatprep.subr.mxu1 %v115_v17 }
  0x1c   :  { %2014 = vmatpush3.msra.mxu1 %v115_v17 }
  0x1d   :  { %2015 = vmatprep.subr.mxu1 %v114_v18 }
  0x1e   :  { %2016 = vmatpush3.msra.mxu1 %v114_v18  ;;  %v2231_v18 = vmov 0.0  }
  0x1f   :  { %2017 = vmatprep.subr.mxu1 %v113_v19  ;;  %2059 = vmatprep.subr.mxu0 %v2231_v18 }
  0x20   :  { %2018 = vmatpush3.msra.mxu1 %v113_v19  ;;  %2067 = vmatprep.mubr.msk.f32.mxu0 %vm3295_vm2, %v2231_v18 }
  0x21   :  { %2019 = vmatprep.subr.mxu1 %v112_v20 }
  0x22   :  { %2020 = vmatpush3.msra.mxu1 %v112_v20 }
  0x23   :  { %2021 = vmatprep.subr.mxu1 %v111_v21 }
  0x24   :  { %2022 = vmatpush3.msra.mxu1 %v111_v21 }
  0x25   :  { %2023 = vmatprep.subr.mxu1 %v110_v22 }
  0x26   :  { %2024 = vmatpush3.msra.mxu1 %v110_v22 }
  0x27   :  { %2025 = vmatprep.subr.mxu1 %v109_v23 }
  0x28   :  { %2026 = vmatpush3.msra.mxu1 %v109_v23 }
  0x29   :  { %2027 = vmatprep.subr.mxu1 %v108_v24 }
  0x2a   :  { %2028 = vmatpush3.msra.mxu1 %v108_v24 }
  0x2b   :  { %2029 = vmatprep.subr.mxu1 %v107_v25 }
  0x2c   :  { %2030 = vmatpush3.msra.mxu1 %v107_v25 }
  0x2d   :  { %2031 = vmatprep.subr.mxu1 %v106_v26 }
  0x2e   :  { %2032 = vmatpush3.msra.mxu1 %v106_v26 }
  0x2f   :  { %2033 = vmatprep.subr.mxu1 %v105_v27 }
  0x30   :  { %2034 = vmatpush3.msra.mxu1 %v105_v27  ;;  %v452_v27 = vld [vmem:[%s3317_s24] sm:$0x1] }
  0x31   :  { %2035 = vmatprep.subr.mxu1 %v104_v28 }
  0x32   :  { %2036 = vmatpush3.msra.mxu1 %v104_v28  ;;  %v70_v28 = vlaneseq }
  0x33   :  { %2037 = vmatprep.subr.mxu1 %v103_v29 }
  0x34   :  { %2038 = vmatpush3.msra.mxu1 %v103_v29  ;;  %v2508_v29 = vshrl.u32 %v70_v28, 7 }
  0x9a   :  { %v309_v30 = vpop.xlane.xlu0 %308 }
  0x9b   :  { %v319_v31 = vsub.f32 %v2357_v1, %v309_v30  ;;  %v2510_v30 = vand.u32 127, %v70_v28 }
  0x9c   :  { %v315_v32 = vpop.xlane.xlu1 %314 }
  0x9d   :  { %v323_v33 = vmul.f32 1.442695, %v319_v31  ;;  %v321_v34 = vsub.f32 %v2370_v5, %v315_v32  ;;  %v2513_v31 = vadd.s32 24, %v2508_v29  ;;  %v2516_v32 = vadd.s32 16, %v2508_v29 }
  0x9e   :  { %v312_v35 = vpop.xlane.xlu0 %311  ;;  %vm3289_vm6 = vcmp.eq.s32.totalorder %v2508_v29, %v2510_v30 }
  0x9f   :  { %2167 = vpow2.f32 %v323_v33  ;;  %v327_v36 = vmul.f32 1.442695, %v321_v34  ;;  %v320_v37 = vsub.f32 %v2380_v8, %v312_v35  ;;  %v540_v33 = vsub.s32 0, %v2508_v29 }
  0xa0   :  { %v318_v38 = vpop.xlane.xlu1 %317  ;;  %v2520_v34 = vadd.s32 8, %v2508_v29  ;;  %vm3287_vm3 = vcmp.eq.s32.totalorder %v2513_v31, %v2510_v30  ;;  %vm3285_vm4 = vcmp.eq.s32.totalorder %v2516_v32, %v2510_v30  ;;  %vm3284_vm7 = vcmp.lt.s32.totalorder %v2510_v30, %v2513_v31 }
  0xa1   :  { %2169 = vpow2.f32 %v327_v36  ;;  %v325_v39 = vmul.f32 1.442695, %v320_v37  ;;  %v322_v40 = vsub.f32 %v2391_v11, %v318_v38  ;;  %vm3286_vm8 = vcmp.lt.s32.totalorder %v2510_v30, %v2516_v32 }
  0xa2   :  { %vm3291_vm5 = vcmp.eq.s32.totalorder %v2520_v34, %v2510_v30  ;;  %vm3288_vm15 = vcmp.lt.s32.totalorder %v2510_v30, %v2520_v34 }
  0xa3   :  { %2171 = vpow2.f32 %v325_v39  ;;  %v329_v41 = vmul.f32 1.442695, %v322_v40 }
  0xa5   :  { %2173 = vpow2.f32 %v329_v41 }
  0xac   :  { %v2168_v42 = vpop.eup %2167 }
  0xad   :  { %v331_v43 = vsel %vm306_vm0, %v2168_v42, 0.0 }
  0xae   :  { %v2170_v44 = vpop.eup %2169  ;;  %332 = vadd.xlane.f32.xlu0 %v331_v43 }
  0xaf   :  { %v337_v45 = vsel %vm306_vm0, %v2170_v44, 0.0 }
  0xb0   :  { %v2172_v46 = vpop.eup %2171 }
  0xb1   :  { %v334_v47 = vsel %vm306_vm0, %v2172_v46, 0.0 }
  0xb2   :  { %v2174_v48 = vpop.eup %2173  ;;  %338 = vadd.xlane.f32.xlu0 %v337_v45  ;;  %335 = vadd.xlane.f32.xlu1 %v334_v47  ;;  %v777_v47 = vld [vmem:[%s3318_s0 + $0x30] sm:$0xff] }
  0xb3   :  { %v340_v49 = vsel %vm306_vm0, %v2174_v48, 0.0 }
  0xb6   :  { %341 = vadd.xlane.f32.xlu1 %v340_v49  ;;  %v775_v49 = vld [vmem:[%s3318_s0 + $0x20] sm:$0xff] }
  0xd3   :  { %v2003_v50 = vpop.f32.mrf.mxu0 }
  0xd4   :  { %v218_v55 = vmul.f32 %v2003_v50, %v100_v52  ;;  %v774_v50 = vld [vmem:[%s3318_s0 + $0x18] sm:$0xff]  ;;  %v772_v52 = vld [vmem:[%s3318_s0 + $0x8] sm:$0xff] }
  0xd5   :  { %v198_v53 = vpop.f32.mrf.mxu0 }
  0xd6   :  { %v217_v54 = vmul.f32 %v198_v53, %v99_v51  ;;  %v773_v51 = vld [vmem:[%s3318_s0 + $0x10] sm:$0xff]  ;;  %v771_v53 = vld [vmem:[%s3318_s0] sm:$0xff] }
  0xd7   :  { %v2006_v56 = vpop.f32.mrf.mxu0 }
  0xd8   :  { %2039 = vmatprep.mubr.f32.mxu1 %v217_v54  ;;  %v220_v61 = vmul.f32 %v2006_v56, %v102_v58 }
  0xd9   :  { %v208_v59 = vpop.f32.mrf.mxu0  ;;  %2040 = vmatmul.mubr.f32.vlgmr.msra.gmra.mxu1 %v218_v55 }
  0xda   :  { %v219_v60 = vmul.f32 %v208_v59, %v101_v57 }
  0xdc   :  { %2042 = vmatprep.mubr.f32.mxu1 %v219_v60 }
  0xdd   :  { %2043 = vmatmul.mubr.f32.gmra.mxu1 %v220_v61 }
 0x137   :  { %v333_v62 = vpop.xlane.xlu0 %332 }
 0x138   :  { %2175 = vrcp.f32 %v333_v62 }
 0x13b   :  { %v336_v2 = vpop.xlane.xlu1 %335  ;;  %v339_v3 = vpop.xlane.xlu0 %338 }
 0x13c   :  { %2177 = vrcp.f32 %v336_v2 }
 0x13d   :  { %2179 = vrcp.f32 %v339_v3 }
 0x13f   :  { %v342_v4 = vpop.xlane.xlu1 %341 }
 0x140   :  { %2181 = vrcp.f32 %v342_v4 }
 0x145   :  { %v2176_v63 = vpop.eup %2175 }
 0x146   :  { %v347_v0 = vmul.f32 %v2176_v63, %v2168_v42 }
 0x148   :  { %2053 = vmatprep.mubr.msk.f32.mxu1 %vm306_vm0, %v347_v0 }
 0x149   :  { %v2178_v12 = vpop.eup %2177 }
 0x14a   :  { %v2180_v13 = vpop.eup %2179  ;;  %v348_v14 = vmul.f32 %v2178_v12, %v2172_v46  ;;  %v778_v46 = vld [vmem:[%s3318_s0 + $0x38] sm:$0xff] }
 0x14b   :  { %v349_v16 = vmul.f32 %v2180_v13, %v2170_v44 }
 0x14d   :  { %v2182_v15 = vpop.eup %2181 }
 0x14e   :  { %v350_v17 = vmul.f32 %v2182_v15, %v2174_v48  ;;  %v776_v48 = vld [vmem:[%s3318_s0 + $0x28] sm:$0xff] }
 0x199   :  { %v2041_v6 = vpop.f32.mrf.mxu1 }
 0x19b   :  { %v287_v7 = vpop.f32.mrf.mxu1 }
 0x19d   :  { %v2044_v9 = vpop.f32.mrf.mxu1 }
 0x19e   :  { %2045 = vmatprep.subr.mxu1 %v2044_v9 }
 0x19f   :  { %v297_v10 = vpop.f32.mrf.mxu1  ;;  %2046 = vmatpush3.msra.mxu1 %v2044_v9 }
 0x1a0   :  { %2047 = vmatprep.subr.mxu1 %v297_v10 }
 0x1a1   :  { %2048 = vmatpush3.msra.mxu1 %v297_v10 }
 0x1a2   :  { %2049 = vmatprep.subr.mxu1 %v2041_v6 }
 0x1a3   :  { %2050 = vmatpush3.msra.mxu1 %v2041_v6 }
 0x1a4   :  { %2051 = vmatprep.subr.mxu1 %v287_v7 }
 0x1a5   :  { %2052 = vmatpush3.msra.mxu1 %v287_v7 }
 0x1a6   :  { %2054 = vmatmul.mubr.msk.f32.vlgmr.msra.gmra.mxu1 %vm306_vm0, %v348_v14  ;;  %855 = vmatprep.subr.mxu1 %v778_v46 }
 0x1a7   :  { %2056 = vmatprep.mubr.msk.f32.mxu1 %vm306_vm0, %v349_v16  ;;  %856 = vmatpush1.msra.mxu1 %v777_v47 }
 0x1a8   :  { %857 = vmatprep.subr.mxu1 %v776_v48 }
 0x1a9   :  { %858 = vmatpush1.msra.mxu1 %v775_v49  ;;  %v89_v49 = vmax.f32 %v2357_v1, 0.0 }
 0x1aa   :  { %2057 = vmatmul.mubr.msk.f32.gmra.mxu1 %vm306_vm0, %v350_v17  ;;  %859 = vmatprep.subr.mxu1 %v774_v50 }
 0x1ab   :  { %895 = vmatprep.mubr.f32.mxu1 %v2231_v18  ;;  %860 = vmatpush1.msra.mxu1 %v773_v51 }
 0x1ac   :  { %861 = vmatprep.subr.mxu1 %v772_v52 }
 0x1ad   :  { %862 = vmatpush1.msra.mxu1 %v771_v53 }
 0x266   :  { %v2477_v19 = vpop.f32.mrf.mxu1 }
 0x267   :  { %v449_v25 = vmax.f32 %v2477_v19, 0.0  ;;  %v92_v19 = vmax.f32 %v2391_v11, 0.0 }
 0x268   :  { %v2479_v20 = vpop.f32.mrf.mxu1 }
 0x269   :  { %v448_v26 = vmax.f32 %v2479_v20, 0.0 }
 0x26a   :  { %v2481_v21 = vpop.f32.mrf.mxu1 }
 0x26b   :  { %v451_v22 = vmax.f32 %v2481_v21, 0.0  ;;  %v91_v21 = vmax.f32 %v2370_v5, 0.0 }
 0x26c   :  { %v2484_v23 = vpop.f32.mrf.mxu1 }
 0x26d   :  { %2060 = vmatpush3.xpose.msk.msra.mxu0 %vm306_vm0, %v451_v22  ;;  %v450_v24 = vmax.f32 %v2484_v23, 0.0 }
 0x26e   :  { %2061 = vmatprep.subr.mxu0 %v2231_v18 }
 0x271   :  { %2062 = vmatpush3.xpose.msk.msra.mxu0 %vm306_vm0, %v450_v24 }
 0x272   :  { %2063 = vmatprep.subr.mxu0 %v2231_v18 }
 0x275   :  { %2064 = vmatpush3.xpose.msk.msra.mxu0 %vm306_vm0, %v449_v25 }
 0x276   :  { %2065 = vmatprep.subr.mxu0 %v2231_v18 }
 0x279   :  { %2066 = vmatpush3.xpose.msk.msra.mxu0 %vm306_vm0, %v448_v26 }
 0x27c   :  { %2068 = vmatmul.mubr.msk.f32.vlgmr.msra.gmra.mxu0 %vm306_vm0, %v452_v27 }
 0x33c   :  { %v534_v35 = vpop.f32.mrf.mxu0 }
 0x33d   :  { %v2528_v36 = vrot.slane %v534_v35, %v540_v33 }
 0x33e   :  { %v2069_v37 = vpop.f32.mrf.mxu0 }
 0x33f   :  { %v545_v38 = vsel %vm3287_vm3, %v2528_v36, 0.0  ;;  %v544_v39 = vsel %vm3285_vm4, %v2528_v36, 0.0  ;;  %v543_v42 = vsel %vm3291_vm5, %v2528_v36, 0.0  ;;  %v542_v43 = vsel %vm3289_vm6, %v2528_v36, 0.0 }
 0x340   :  { %v555_v40 = vsel %vm306_vm0, %v545_v38, 0.0  ;;  %v552_v41 = vsel %vm306_vm0, %v544_v39, 0.0  ;;  %v549_v44 = vsel %vm306_vm0, %v543_v42, 0.0  ;;  %v546_v45 = vsel %vm306_vm0, %v542_v43, 0.0 }
 0x341   :  { %556 = vadd.xlane.f32.xlu0 %v555_v40  ;;  %553 = vadd.xlane.f32.xlu1 %v552_v41  ;;  %vm86_vm5 = vcmp.gt.f32.partialorder %v2380_v8, -1e+20 }
 0x345   :  { %550 = vadd.xlane.f32.xlu0 %v549_v44  ;;  %547 = vadd.xlane.f32.xlu1 %v546_v45 }
 0x3ca   :  { %v557_v54 = vpop.xlane.xlu0 %556  ;;  %v554_v55 = vpop.xlane.xlu1 %553 }
 0x3cb   :  { %vm561_vm9 = vcmp.gt.f32.partialorder %v2528_v36, %v557_v54  ;;  %vm565_vm10 = vcmp.eq.f32.partialorder %v2528_v36, %v557_v54  ;;  %v1829_v56 = vmul.f32 -1.442695, %v557_v54  ;;  %vm564_vm12 = vcmp.eq.f32.partialorder %v2528_v36, %v554_v55  ;;  %v818_v54 = vld [vmem:[%s3262_s7 + $0xf8] sm:$0xff] }
 0x3cc   :  { %vm573_vm11 = vmand %vm565_vm10, %vm3284_vm7  ;;  %v1828_v57 = vmul.f32 -1.442695, %v554_v55  ;;  %vm3290_vm10 = vcmp.lt.s32.totalorder %v2510_v30, %v2508_v29 }
 0x3cd   :  { %2183 = vpow2.f32 %v1829_v56  ;;  %vm2592_vm14 = vmand %vm564_vm12, %vm3286_vm8  ;;  %vm3292_vm12 = vcmp.ne.s32.totalorder %v2510_v30, %v2513_v31  ;;  %vm560_vm8 = vcmp.gt.f32.partialorder %v2528_v36, %v554_v55  ;;  %v802_v56 = vld [vmem:[%s3262_s7 + $0x78] sm:$0xff] }
 0x3ce   :  { %2185 = vpow2.f32 %v1828_v57  ;;  %v551_v59 = vpop.xlane.xlu0 %550  ;;  %v548_v60 = vpop.xlane.xlu1 %547  ;;  %vm577_vm1 = vmor %vm561_vm9, %vm573_vm11  ;;  %vm3296_vm11 = vcmp.gt.f32.partialorder %v2370_v5, -1e+20 }
 0x3cf   :  { %vm563_vm7 = vcmp.eq.f32.partialorder %v2528_v36, %v551_v59  ;;  %v1827_v61 = vmul.f32 -1.442695, %v551_v59  ;;  %vm581_vm4 = vmand %vm577_vm1, %vm3297_vm13  ;;  %vm562_vm9 = vcmp.eq.f32.partialorder %v2528_v36, %v548_v60  ;;  %v1826_v63 = vmul.f32 -1.442695, %v548_v60 }
 0x3d0   :  { %vm2609_vm3 = vmand %vm563_vm7, %vm3288_vm15  ;;  %vm3293_vm15 = vcmp.ne.s32.totalorder %v2510_v30, %v2516_v32  ;;  %vm559_vm6 = vcmp.gt.f32.partialorder %v2528_v36, %v551_v59 }
 0x3d1   :  { %2187 = vpow2.f32 %v1827_v61  ;;  %vm2617_vm1 = vmand %vm562_vm9, %vm3290_vm10 }
 0x3d2   :  { %2189 = vpow2.f32 %v1826_v63  ;;  %vm589_vm7 = vmand %vm581_vm4, %vm3292_vm12  ;;  %vm583_vm12 = vcmp.ne.s32.totalorder %v2510_v30, %v2520_v34  ;;  %v801_v63 = vld [vmem:[%s3262_s7 + $0x70] sm:$0xff] }
 0x3d3   :  { %v1825_v2 = vsel %vm589_vm7, 1.0, %v2231_v18  ;;  %vm576_vm9 = vmor %vm560_vm8, %vm2592_vm14  ;;  %vm558_vm7 = vcmp.gt.f32.partialorder %v2528_v36, %v548_v60  ;;  %v817_v60 = vld [vmem:[%s3262_s7 + $0xf0] sm:$0xff] }
 0x3d4   :  { %v607_v3 = vsel %vm306_vm0, %v1825_v2, 0.0  ;;  %vm580_vm10 = vmand %vm576_vm9, %vm3296_vm11  ;;  %vm3300_vm9 = vcmp.gt.f32.partialorder %v2357_v1, -1e+20 }
 0x3d5   :  { %608 = vadd.xlane.f32.xlu0 %v607_v3  ;;  %vm588_vm4 = vmand %vm580_vm10, %vm3293_vm15  ;;  %vm3298_vm15 = vcmp.ne.s32.totalorder %v2510_v30, %v2508_v29 }
 0x3d6   :  { %v1824_v4 = vsel %vm588_vm4, 1.0, %v2231_v18  ;;  %vm575_vm8 = vmor %vm559_vm6, %vm2609_vm3 }
 0x3d7   :  { %v604_v6 = vsel %vm306_vm0, %v1824_v4, 0.0  ;;  %vm579_vm14 = vmand %vm575_vm8, %vm86_vm5 }
 0x3d8   :  { %605 = vadd.xlane.f32.xlu1 %v604_v6  ;;  %vm587_vm10 = vmand %vm579_vm14, %vm583_vm12 }
 0x3d9   :  { %v1823_v7 = vsel %vm587_vm10, 1.0, %v2231_v18  ;;  %vm574_vm3 = vmor %vm558_vm7, %vm2617_vm1  ;;  %vm3294_vm1 = vcmask 7168  }
 0x3da   :  { %v2184_v9 = vpop.eup %2183  ;;  %v601_v10 = vsel %vm306_vm0, %v1823_v7, 0.0  ;;  %vm578_vm6 = vmand %vm574_vm3, %vm3300_vm9  ;;  %vm1414_vm3 = vcmask 253952  }
 0x3db   :  { %v2186_v12 = vpop.eup %2185  ;;  %v639_v13 = vadd.f32 1.0, %v2184_v9  ;;  %602 = vadd.xlane.f32.xlu0 %v601_v10  ;;  %vm586_vm4 = vmand %vm578_vm6, %vm3298_vm15 }
 0x3dc   :  { %v638_v14 = vadd.f32 1.0, %v2186_v12  ;;  %v1822_v15 = vsel %vm586_vm4, 1.0, %v2231_v18 }
 0x3dd   :  { %2191 = vrcp.f32 %v639_v13  ;;  %v598_v16 = vsel %vm306_vm0, %v1822_v15, 0.0  ;;  %v799_v13 = vld [vmem:[%s3262_s7 + $0x60] sm:$0xff]  ;;  %v814_v15 = vld [vmem:[%s3262_s7 + $0xd8] sm:$0xff] }
 0x3de   :  { %v2188_v17 = vpop.eup %2187  ;;  %2193 = vrcp.f32 %v638_v14  ;;  %599 = vadd.xlane.f32.xlu1 %v598_v16  ;;  %v610_v27 = vadd.f32 %v601_v10, %v598_v16  ;;  %v815_v10 = vld [vmem:[%s3262_s7 + $0xe0] sm:$0xff] }
 0x3df   :  { %v2190_v28 = vpop.eup %2189  ;;  %v637_v35 = vadd.f32 1.0, %v2188_v17  ;;  %v798_v17 = vld [vmem:[%s3262_s7 + $0x58] sm:$0xff] }
 0x3e0   :  { %v636_v36 = vadd.f32 1.0, %v2190_v28  ;;  %v611_v37 = vadd.f32 %v610_v27, %v604_v6  ;;  %v800_v6 = vld [vmem:[%s3262_s7 + $0x68] sm:$0xff]  ;;  %v813_v28 = vld [vmem:[%s3262_s7 + $0xd0] sm:$0xff] }
 0x3e1   :  { %2195 = vrcp.f32 %v637_v35 }
 0x3e2   :  { %2197 = vrcp.f32 %v636_v36  ;;  %v2664_v38 = vadd.f32 %v611_v37, %v607_v3  ;;  %v816_v3 = vld [vmem:[%s3262_s7 + $0xe8] sm:$0xff]  ;;  %v797_v36 = vld [vmem:[%s3262_s7 + $0x50] sm:$0xff] }
 0x3e3   :  { %v812_v37 = vld [vmem:[%s3262_s7 + $0xc8] sm:$0xff] }
 0x3ea   :  { %v2192_v39 = vpop.eup %2191 }
 0x3eb   :  { %v2194_v40 = vpop.eup %2193  ;;  %1788 = vst.msk [vmem:[%s3261_s20 + $0x18] sm:$0xff] %vm3294_vm1, %v2192_v39  ;;  %v2705_v20 = vmul.f32 %v2192_v39, %v451_v22  ;;  %v90_v22 = vmax.f32 %v2380_v8, 0.0 }
 0x3ec   :  { %1787 = vst.msk [vmem:[%s3261_s20 + $0x10] sm:$0xff] %vm3294_vm1, %v2194_v40  ;;  %v2698_v45 = vmul.f32 %v2194_v40, %v450_v24  ;;  %v796_v40 = vld [vmem:[%s3262_s7 + $0x48] sm:$0xff] }
 0x3ee   :  { %v2196_v41 = vpop.eup %2195 }
 0x3ef   :  { %v2198_v42 = vpop.eup %2197  ;;  %1786 = vst.msk [vmem:[%s3261_s20 + $0x8] sm:$0xff] %vm3294_vm1, %v2196_v41  ;;  %v2691_v44 = vmul.f32 %v2196_v41, %v449_v25  ;;  %v811_v41 = vld [vmem:[%s3262_s7 + $0xc0] sm:$0xff] }
 0x3f0   :  { %1785 = vst.msk [vmem:[%s3261_s20] sm:$0xff] %vm3294_vm1, %v2198_v42  ;;  %v2684_v43 = vmul.f32 %v2198_v42, %v448_v26 }
 0x3f2   :  { %1838 = vmatmul.mubr.msk.f32.vlgmr.msra.gmra.mxu1 %vm306_vm0, %v2684_v43 }
 0x3f3   :  { %901 = vmatprep.mubr.f32.mxu1 %v2231_v18 }
 0x3f6   :  { %1839 = vmatmul.mubr.msk.f32.gmra.mxu1 %vm306_vm0, %v2691_v44 }
 0x3f7   :  { %907 = vmatprep.mubr.f32.mxu1 %v2231_v18 }
 0x3fa   :  { %1840 = vmatmul.mubr.msk.f32.gmra.mxu1 %vm306_vm0, %v2698_v45 }
 0x3fb   :  { %913 = vmatprep.mubr.f32.mxu1 %v2231_v18 }
 0x3fe   :  { %1841 = vmatmul.mubr.msk.f32.gmra.mxu1 %vm306_vm0, %v2705_v20 }
 0x45e   :  { %v2710_v25 = vpop.xlane.xlu0 %608 }
 0x45f   :  { %vm3304_vm7 = vcmp.lt.f32.partialorder %v2710_v25, 8.0 }
 0x460   :  { %2070 = vmatprep.subr.msk.mxu0 %vm3304_vm7, %v92_v19  ;;  %v1355_v23 = vsel %vm3304_vm7, %v2705_v20, -1e+30  ;;  %v663_v9 = vsel %vm3304_vm7, %v92_v19, 0.0 }
 0x461   :  { %v2718_v24 = vpop.xlane.xlu1 %605  ;;  %2071 = vmatpush3.msk.msra.mxu0 %vm3304_vm7, %v92_v19  ;;  %v1435_v26 = vsel %vm306_vm0, %v1355_v23, -inf  ;;  %v795_v19 = vld [vmem:[%s3262_s7 + $0x40] sm:$0xff]  ;;  %v810_v23 = vld [vmem:[%s3262_s7 + $0xb8] sm:$0xff] }
 0x462   :  { %vm3302_vm8 = vcmp.lt.f32.partialorder %v2718_v24, 8.0 }
 0x463   :  { %2072 = vmatprep.subr.msk.mxu0 %vm3302_vm8, %v91_v21  ;;  %v1354_v46 = vsel %vm3302_vm8, %v2698_v45, -1e+30  ;;  %v662_v62 = vsel %vm3302_vm8, %v91_v21, 0.0 }
 0x464   :  { %v2731_v47 = vpop.xlane.xlu0 %602  ;;  %2073 = vmatpush3.msk.msra.mxu0 %vm3302_vm8, %v91_v21  ;;  %v1434_v48 = vsel %vm306_vm0, %v1354_v46, -inf  ;;  %v793_v46 = vld [vmem:[%s3262_s7 + $0x30] sm:$0xff] }
 0x465   :  { %vm3301_vm14 = vcmp.lt.f32.partialorder %v2731_v47, 8.0  ;;  %v1436_v50 = vmax.f32 %v1434_v48, %v1435_v26  ;;  %v809_v26 = vld [vmem:[%s3262_s7 + $0xb0] sm:$0xff]  ;;  %v808_v48 = vld [vmem:[%s3262_s7 + $0xa8] sm:$0xff] }
 0x466   :  { %2074 = vmatprep.subr.msk.mxu0 %vm3301_vm14, %v90_v22  ;;  %v1353_v51 = vsel %vm3301_vm14, %v2691_v44, -1e+30  ;;  %v661_v59 = vsel %vm3301_vm14, %v90_v22, 0.0 }
 0x467   :  { %v2743_v52 = vpop.xlane.xlu1 %599  ;;  %2075 = vmatpush3.msk.msra.mxu0 %vm3301_vm14, %v90_v22  ;;  %v1437_v53 = vrot.slane %v1436_v50, 4  ;;  %v1377_v58 = vsel %vm306_vm0, %v1353_v51, -inf  ;;  %v794_v22 = vld [vmem:[%s3262_s7 + $0x38] sm:$0xff]  ;;  %v791_v51 = vld [vmem:[%s3262_s7 + $0x20] sm:$0xff] }
 0x468   :  { %vm3299_vm10 = vcmp.lt.f32.partialorder %v2743_v52, 8.0 }
 0x469   :  { %v660_v55 = vsel %vm3299_vm10, %v89_v49, 0.0  ;;  %2076 = vmatprep.subr.msk.mxu0 %vm3299_vm10, %v89_v49  ;;  %v1438_v57 = vmax.f32 %v1436_v50, %v1437_v53  ;;  %v1352_v61 = vsel %vm3299_vm10, %v2684_v43, -1e+30  ;;  %v807_v50 = vld [vmem:[%s3262_s7 + $0xa0] sm:$0xff]  ;;  %v806_v53 = vld [vmem:[%s3262_s7 + $0x98] sm:$0xff] }
 0x46a   :  { %2078 = vmatprep.mubr.msk.f32.mxu0 %vm306_vm0, %v660_v55  ;;  %2077 = vmatpush3.msk.msra.mxu0 %vm3299_vm10, %v89_v49  ;;  %v1376_v2 = vsel %vm306_vm0, %v1352_v61, -inf  ;;  %v792_v49 = vld [vmem:[%s3262_s7 + $0x28] sm:$0xff]  ;;  %v805_v55 = vld [vmem:[%s3262_s7 + $0x90] sm:$0xff] }
 0x46b   :  { %2079 = vmatmul.mubr.msk.f32.vlgmr.msra.gmra.mxu0 %vm306_vm0, %v661_v59  ;;  %1915 = vmatprep.subr.mxu0 %v818_v54  ;;  %v1439_v0 = vrot.slane %v1438_v57, 2  ;;  %v1378_v4 = vmax.f32 %v1376_v2, %v1377_v58  ;;  %v790_v54 = vld [vmem:[%s3262_s7 + $0x18] sm:$0xff]  ;;  %v788_v58 = vld [vmem:[%s3262_s7 + $0x8] sm:$0xff]  ;;  %v803_v59 = vld [vmem:[%s3262_s7 + $0x80] sm:$0xff] }
 0x46c   :  { %2081 = vmatprep.mubr.msk.f32.mxu0 %vm306_vm0, %v662_v62  ;;  %1916 = vmatpush3.msra.mxu0 %v802_v56  ;;  %v789_v56 = vld [vmem:[%s3262_s7 + $0x10] sm:$0xff]  ;;  %v780_v62 = vld [vmem:[%s3263_s3 + $0x8] sm:$0xff] }
 0x46d   :  { %1917 = vmatprep.subr.mxu0 %v817_v60  ;;  %v1440_v7 = vmax.f32 %v1438_v57, %v1439_v0  ;;  %v1379_v12 = vrot.slane %v1378_v4, 4  ;;  %v804_v57 = vld [vmem:[%s3262_s7 + $0x88] sm:$0xff]  ;;  %v787_v60 = vld [vmem:[%s3262_s7] sm:$0xff] }
 0x46e   :  { %1918 = vmatpush3.msra.mxu0 %v801_v63  ;;  %v779_v63 = vld [vmem:[%s3263_s3] sm:$0xff] }
 0x46f   :  { %2082 = vmatmul.mubr.msk.f32.gmra.mxu0 %vm306_vm0, %v663_v9  ;;  %1919 = vmatprep.subr.mxu0 %v816_v3  ;;  %v1441_v14 = vrot.slane %v1440_v7, 1  ;;  %v1380_v16 = vmax.f32 %v1378_v4, %v1379_v12 }
 0x470   :  { %1920 = vmatpush3.msra.mxu0 %v800_v6  ;;  %v782_v6 = vld [vmem:[%s3263_s3 + $0x18] sm:$0xff] }
 0x471   :  { %1921 = vmatprep.subr.mxu0 %v815_v10  ;;  %v1442_v27 = vmax.f32 %v1440_v7, %v1441_v14  ;;  %v1381_v35 = vrot.slane %v1380_v16, 2  ;;  %v781_v7 = vld [vmem:[%s3263_s3 + $0x10] sm:$0xff]  ;;  %v784_v14 = vld [vmem:[%s3263_s3 + $0x28] sm:$0xff] }
 0x472   :  { %1922 = vmatpush3.msra.mxu0 %v799_v13 }
 0x473   :  { %1923 = vmatprep.subr.mxu0 %v814_v15  ;;  %1472 = vst.msk [vmem:[#allocation2 + $0x1] sm:$0x1] %vm1414_vm3, %v1442_v27  ;;  %v1382_v39 = vmax.f32 %v1380_v16, %v1381_v35  ;;  %v783_v15 = vld [vmem:[%s3263_s3 + $0x20] sm:$0xff]  ;;  %v786_v35 = vld [vmem:[%s3263_s3 + $0x38] sm:$0xff] }
 0x474   :  { %1924 = vmatpush3.msra.mxu0 %v798_v17 }
 0x475   :  { %1925 = vmatprep.subr.mxu0 %v813_v28  ;;  %v1383_v42 = vrot.slane %v1382_v39, 1 }
 0x476   :  { %1926 = vmatpush3.msra.mxu0 %v797_v36  ;;  %v785_v36 = vld [vmem:[%s3263_s3 + $0x30] sm:$0xff] }
 0x477   :  { %1927 = vmatprep.subr.mxu0 %v812_v37  ;;  %v1384_v21 = vmax.f32 %v1382_v39, %v1383_v42 }
 0x478   :  { %1928 = vmatpush3.msra.mxu0 %v796_v40 }
 0x479   :  { %1929 = vmatprep.subr.mxu0 %v811_v41  ;;  %1415 = vst.msk [vmem:[#allocation2] sm:$0x1] %vm1414_vm3, %v1384_v21  ;;  %v613_v41 = vrot.slane %v2664_v38, 4 }
 0x47a   :  { %1930 = vmatpush3.msra.mxu0 %v795_v19 }
 0x47b   :  { %1931 = vmatprep.subr.mxu0 %v810_v23  ;;  %v614_v42 = vadd.f32 %v613_v41, %v2664_v38 }
 0x47c   :  { %1932 = vmatpush3.msra.mxu0 %v794_v22 }
 0x47d   :  { %1933 = vmatprep.subr.mxu0 %v809_v26  ;;  %v615_v19 = vrot.slane %v614_v42, 2 }
 0x47e   :  { %1934 = vmatpush3.msra.mxu0 %v793_v46 }
 0x47f   :  { %1935 = vmatprep.subr.mxu0 %v808_v48  ;;  %v616_v23 = vadd.f32 %v615_v19, %v614_v42 }
 0x480   :  { %1936 = vmatpush3.msra.mxu0 %v792_v49 }
 0x481   :  { %1937 = vmatprep.subr.mxu0 %v807_v50  ;;  %v617_v21 = vrot.slane %v616_v23, 1 }
 0x482   :  { %1938 = vmatpush3.msra.mxu0 %v791_v51 }
 0x483   :  { %1939 = vmatprep.subr.mxu0 %v806_v53  ;;  %v2896_v22 = vadd.f32 %v617_v21, %v616_v23 }
 0x484   :  { %1940 = vmatpush3.msra.mxu0 %v790_v54 }
 0x485   :  { %1941 = vmatprep.subr.mxu0 %v805_v55  ;;  %vm3303_vm6 = vcmp.ge.f32.partialorder %v2896_v22, 8.0 }
 0x486   :  { %1942 = vmatpush3.msra.mxu0 %v789_v56  ;;  %vm764_vm4 = vmand %vm86_vm5, %vm3303_vm6 }
 0x487   :  { %1943 = vmatprep.subr.mxu0 %v804_v57  ;;  %vm763_vm3 = vmand %vm3300_vm9, %vm3303_vm6 }
 0x488   :  { %1944 = vmatpush3.msra.mxu0 %v788_v58  ;;  %vm766_vm1 = vmand %vm3297_vm13, %vm3303_vm6 }
 0x489   :  { %1945 = vmatprep.subr.mxu0 %v803_v59 }
 0x48a   :  { %1946 = vmatpush3.msra.mxu0 %v787_v60 }
 0x48b   :  { %2109 = vmatprep.subr.mxu0 %v2231_v18 }
 0x4b2   :  { %v897_v61 = vpop.f32.mrf.mxu1 }
 0x4b3   :  { %v920_v3 = vmul.f32 %v897_v61, %v779_v63 }
 0x4b4   :  { %v899_v0 = vpop.f32.mrf.mxu1 }
 0x4b5   :  { %v921_v2 = vmul.f32 %v899_v0, %v780_v62 }
 0x4b6   :  { %v903_v4 = vpop.f32.mrf.mxu1 }
 0x4b7   :  { %992 = vmatprep.mubr.f32.mxu0 %v921_v2  ;;  %v922_v12 = vmul.f32 %v903_v4, %v781_v7 }
 0x4b8   :  { %v905_v9 = vpop.f32.mrf.mxu1  ;;  %993 = vmatmul.mubr.f32.vlgmr.msra.gmra.mxu0 %v920_v3 }
 0x4b9   :  { %v923_v10 = vmul.f32 %v905_v9, %v782_v6 }
 0x4ba   :  { %v909_v13 = vpop.f32.mrf.mxu1 }
 0x4bb   :  { %997 = vmatprep.mubr.f32.mxu0 %v923_v10  ;;  %v924_v27 = vmul.f32 %v909_v13, %v783_v15 }
 0x4bc   :  { %v911_v16 = vpop.f32.mrf.mxu1  ;;  %998 = vmatmul.mubr.f32.gmra.mxu0 %v922_v12 }
 0x4bd   :  { %v925_v17 = vmul.f32 %v911_v16, %v784_v14 }
 0x4be   :  { %v915_v28 = vpop.f32.mrf.mxu1 }
 0x4bf   :  { %1002 = vmatprep.mubr.f32.mxu0 %v925_v17  ;;  %v926_v40 = vmul.f32 %v915_v28, %v785_v36 }
 0x4c0   :  { %v917_v37 = vpop.f32.mrf.mxu1  ;;  %1003 = vmatmul.mubr.f32.gmra.mxu0 %v924_v27 }
 0x4c1   :  { %v927_v39 = vmul.f32 %v917_v37, %v786_v35 }
 0x4c3   :  { %1007 = vmatprep.mubr.f32.mxu0 %v927_v39 }
 0x4c4   :  { %1008 = vmatmul.mubr.f32.gmra.mxu0 %v926_v40 }
 0x4c5   :  { %2141 = vmatprep.mubr.msk.f32.mxu0 %vm3295_vm2, %v2231_v18 }
 0x52b   :  { %v2080_v26 = vpop.f32.mrf.mxu0 }
 0x52c   :  { %v768_v46 = vsel %vm764_vm4, %v2080_v26, -1e+30  ;;  %vm765_vm4 = vmand %vm3296_vm11, %vm3303_vm6  ;;  %vm3329_vm11 = vcmp.lt.s32.totalorder %v2510_v30, %v2520_v34 }
 0x52d   :  { %v742_v48 = vpop.f32.mrf.mxu0  ;;  %v1016_v38 = vsel %vm306_vm0, %v768_v46, -inf }
 0x52e   :  { %v767_v49 = vsel %vm763_vm3, %v742_v48, -1e+30  ;;  %1017 = vmax.xlane.f32.xlu1 %v1016_v38  ;;  %vm3326_vm3 = vcmp.eq.s32.totalorder %v2508_v29, %v2510_v30 }
 0x52f   :  { %v2083_v50 = vpop.f32.mrf.mxu0  ;;  %v1013_v51 = vsel %vm306_vm0, %v767_v49, -inf }
 0x530   :  { %v770_v53 = vsel %vm766_vm1, %v2083_v50, -1e+30  ;;  %1014 = vmax.xlane.f32.xlu0 %v1013_v51  ;;  %vm3325_vm1 = vcmp.eq.s32.totalorder %v2520_v34, %v2510_v30 }
 0x531   :  { %v752_v54 = vpop.f32.mrf.mxu0  ;;  %v1022_v55 = vsel %vm306_vm0, %v770_v53, -inf }
 0x532   :  { %v769_v56 = vsel %vm765_vm4, %v752_v54, -1e+30  ;;  %1023 = vmax.xlane.f32.xlu1 %v1022_v55  ;;  %vm3327_vm4 = vcmp.eq.s32.totalorder %v2513_v31, %v2510_v30 }
 0x533   :  { %v1019_v57 = vsel %vm306_vm0, %v769_v56, -inf }
 0x534   :  { %1020 = vmax.xlane.f32.xlu0 %v1019_v57 }
 0x578   :  { %v1947_v58 = vpop.f32.mrf.mxu0 }
 0x57a   :  { %v1948_v59 = vpop.f32.mrf.mxu0 }
 0x57b   :  { %v1949_v7 = vadd.f32 %v1948_v59, %v1947_v58 }
 0x57c   :  { %v1950_v60 = vpop.f32.mrf.mxu0 }
 0x57e   :  { %v1951_v61 = vpop.f32.mrf.mxu0 }
 0x57f   :  { %v1952_v6 = vadd.f32 %v1951_v61, %v1950_v60 }
 0x580   :  { %v1953_v62 = vpop.f32.mrf.mxu0 }
 0x582   :  { %v1954_v63 = vpop.f32.mrf.mxu0 }
 0x583   :  { %v1955_v4 = vadd.f32 %v1954_v63, %v1953_v62 }
 0x584   :  { %v1956_v0 = vpop.f32.mrf.mxu0 }
 0x586   :  { %v1957_v2 = vpop.f32.mrf.mxu0 }
 0x587   :  { %v1958_v3 = vadd.f32 %v1957_v2, %v1956_v0 }
 0x589   :  { %2084 = vmatprep.subr.mxu1 %v1958_v3 }
 0x58a   :  { %2085 = vmatpush3.msra.mxu1 %v1958_v3  ;;  %v1158_v3 = vld [vmem:[%s3264_s9] sm:$0x1]  ;;  %s2235_s9 = smov 96  }
 0x58b   :  { %2086 = vmatprep.subr.mxu1 %v1955_v4 }
 0x58c   :  { %2087 = vmatpush3.msra.mxu1 %v1955_v4 }
 0x58d   :  { %2088 = vmatprep.subr.mxu1 %v1952_v6 }
 0x58e   :  { %2089 = vmatpush3.msra.mxu1 %v1952_v6 }
 0x58f   :  { %2090 = vmatprep.subr.mxu1 %v1949_v7 }
 0x590   :  { %2091 = vmatpush3.msra.mxu1 %v1949_v7 }
 0x591   :  { %2098 = vmatprep.subr.mxu1 %v2231_v18 }
 0x5b7   :  { %v1018_v9 = vpop.xlane.xlu1 %1017 }
 0x5b8   :  { %v1026_v10 = vsub.f32 %v768_v46, %v1018_v9 }
 0x5b9   :  { %v1015_v12 = vpop.xlane.xlu0 %1014 }
 0x5ba   :  { %v1031_v13 = vmul.f32 1.442695, %v1026_v10  ;;  %v1025_v14 = vsub.f32 %v767_v49, %v1015_v12 }
 0x5bb   :  { %v1024_v15 = vpop.xlane.xlu1 %1023 }
 0x5bc   :  { %2199 = vpow2.f32 %v1031_v13  ;;  %v1029_v16 = vmul.f32 1.442695, %v1025_v14  ;;  %v1028_v17 = vsub.f32 %v770_v53, %v1024_v15 }
 0x5bd   :  { %v1021_v27 = vpop.xlane.xlu0 %1020 }
 0x5be   :  { %2201 = vpow2.f32 %v1029_v16  ;;  %v1035_v28 = vmul.f32 1.442695, %v1028_v17  ;;  %v1027_v35 = vsub.f32 %v769_v56, %v1021_v27 }
 0x5c0   :  { %2203 = vpow2.f32 %v1035_v28  ;;  %v1033_v36 = vmul.f32 1.442695, %v1027_v35 }
 0x5c2   :  { %2205 = vpow2.f32 %v1033_v36 }
 0x5c9   :  { %v2200_v37 = vpop.eup %2199 }
 0x5ca   :  { %v1040_v39 = vsel %vm306_vm0, %v2200_v37, 0.0 }
 0x5cb   :  { %v2202_v40 = vpop.eup %2201  ;;  %1041 = vadd.xlane.f32.xlu1 %v1040_v39 }
 0x5cc   :  { %v1037_v41 = vsel %vm306_vm0, %v2202_v40, 0.0 }
 0x5cd   :  { %v2204_v42 = vpop.eup %2203  ;;  %1038 = vadd.xlane.f32.xlu0 %v1037_v41  ;;  %v1358_v41 = vsel %vm3302_vm8, %v2698_v45, 0.0  ;;  %vm3336_vm8 = vcmp.lt.s32.totalorder %v2510_v30, %v2516_v32 }
 0x5ce   :  { %v1046_v19 = vsel %vm306_vm0, %v2204_v42, 0.0  ;;  %v1443_v45 = vsel %vm306_vm0, %v1358_v41, 0.0 }
 0x5cf   :  { %v2206_v23 = vpop.eup %2205  ;;  %1047 = vadd.xlane.f32.xlu1 %v1046_v19 }
 0x5d0   :  { %v1043_v21 = vsel %vm306_vm0, %v2206_v23, 0.0 }
 0x5d1   :  { %1044 = vadd.xlane.f32.xlu0 %v1043_v21  ;;  %v1499_v21 = vld [vmem:[%s3266_s10 + $0x50] sm:$0xff] }
 0x654   :  { %v1042_v26 = vpop.xlane.xlu1 %1041 }
 0x655   :  { %2207 = vrcp.f32 %v1042_v26  ;;  %v1498_v26 = vld [vmem:[%s3266_s10 + $0x48] sm:$0xff] }
 0x656   :  { %v1039_v46 = vpop.xlane.xlu0 %1038 }
 0x657   :  { %2209 = vrcp.f32 %v1039_v46 }
 0x658   :  { %v1048_v48 = vpop.xlane.xlu1 %1047 }
 0x659   :  { %2211 = vrcp.f32 %v1048_v48 }
 0x65a   :  { %v1045_v38 = vpop.xlane.xlu0 %1044 }
 0x65b   :  { %2213 = vrcp.f32 %v1045_v38 }
 0x662   :  { %v2208_v49 = vpop.eup %2207 }
 0x663   :  { %v1054_v53 = vmul.f32 %v2208_v49, %v2200_v37 }
 0x664   :  { %v2210_v50 = vpop.eup %2209 }
 0x665   :  { %v1053_v51 = vmul.f32 %v2210_v50, %v2202_v40 }
 0x666   :  { %v2212_v54 = vpop.eup %2211 }
 0x667   :  { %2092 = vmatprep.mubr.msk.f32.mxu1 %vm306_vm0, %v1053_v51  ;;  %v1056_v57 = vmul.f32 %v2212_v54, %v2204_v42  ;;  %v1359_v42 = vsel %vm3304_vm7, %v2705_v20, 0.0 }
 0x668   :  { %v2214_v55 = vpop.eup %2213  ;;  %2093 = vmatmul.mubr.msk.f32.vlgmr.msra.gmra.mxu1 %vm306_vm0, %v1054_v53  ;;  %v1444_v20 = vsel %vm306_vm0, %v1359_v42, 0.0  ;;  %v1504_v42 = vld [vmem:[%s3266_s10 + $0x78] sm:$0xff] }
 0x669   :  { %v1055_v56 = vmul.f32 %v2214_v55, %v2206_v23  ;;  %v1445_v46 = vadd.f32 %v1444_v20, %v1443_v45  ;;  %2110 = vmatpush3.msra.mxu0 %v1504_v42  ;;  %v1502_v23 = vld [vmem:[%s3266_s10 + $0x68] sm:$0xff]  ;;  %v1501_v45 = vld [vmem:[%s3266_s10 + $0x60] sm:$0xff]  ;;  %v1500_v20 = vld [vmem:[%s3266_s10 + $0x58] sm:$0xff] }
 0x66a   :  { %2111 = vmatprep.subr.mxu0 %v2231_v18 }
 0x66b   :  { %2095 = vmatprep.mubr.msk.f32.mxu1 %vm306_vm0, %v1055_v56  ;;  %v1446_v49 = vrot.slane %v1445_v46, 4 }
 0x66c   :  { %2096 = vmatmul.mubr.msk.f32.gmra.mxu1 %vm306_vm0, %v1056_v57 }
 0x66d   :  { %2106 = vmatprep.mubr.msk.f32.mxu1 %vm3295_vm2, %v2231_v18  ;;  %v1447_v55 = vadd.f32 %v1446_v49, %v1445_v46  ;;  %v1497_v46 = vld [vmem:[%s3266_s10 + $0x40] sm:$0xff] }
 0x728   :  { %v2930_v58 = vpop.f32.mrf.mxu1 }
 0x729   :  { %v1155_v0 = vmax.f32 %v2930_v58, 0.0 }
 0x72a   :  { %v2932_v59 = vpop.f32.mrf.mxu1 }
 0x72b   :  { %v1154_v2 = vmax.f32 %v2932_v59, 0.0 }
 0x72c   :  { %v2934_v60 = vpop.f32.mrf.mxu1 }
 0x72d   :  { %v1157_v61 = vmax.f32 %v2934_v60, 0.0 }
 0x72e   :  { %v2937_v62 = vpop.f32.mrf.mxu1 }
 0x72f   :  { %2099 = vmatpush3.xpose.msk.msra.mxu1 %vm306_vm0, %v1157_v61  ;;  %v1156_v63 = vmax.f32 %v2937_v62, 0.0 }
 0x730   :  { %2100 = vmatprep.subr.mxu1 %v2231_v18 }
 0x733   :  { %2101 = vmatpush3.xpose.msk.msra.mxu1 %vm306_vm0, %v1156_v63 }
 0x734   :  { %2102 = vmatprep.subr.mxu1 %v2231_v18 }
 0x737   :  { %2103 = vmatpush3.xpose.msk.msra.mxu1 %vm306_vm0, %v1155_v0 }
 0x738   :  { %2104 = vmatprep.subr.mxu1 %v2231_v18 }
 0x73b   :  { %2105 = vmatpush3.xpose.msk.msra.mxu1 %vm306_vm0, %v1154_v2 }
 0x73c   :  { %2144 = vmatprep.subr.mxu1 %v2231_v18 }
 0x73e   :  { %2107 = vmatmul.mubr.msk.f32.vlgmr.msra.gmra.mxu1 %vm306_vm0, %v1158_v3 }
 0x73f   :  { %2152 = vmatprep.mubr.msk.f32.mxu1 %vm3295_vm2, %v2231_v18  ;;  %vm3328_vm2 = vcmp.eq.s32.totalorder %v2516_v32, %v2510_v30 }
 0x7fe   :  { %v1240_v4 = vpop.f32.mrf.mxu1 }
 0x7ff   :  { %v1247_v6 = vrot.slane %v1240_v4, %v540_v33 }
 0x800   :  { %v2108_v7 = vpop.f32.mrf.mxu1 }
 0x801   :  { %v1249_v9 = vsel %vm3325_vm1, %v1247_v6, 0.0  ;;  %v1248_v10 = vsel %vm3326_vm3, %v1247_v6, 0.0  ;;  %v1251_v14 = vsel %vm3327_vm4, %v1247_v6, 0.0  ;;  %v1250_v33 = vsel %vm3328_vm2, %v1247_v6, 0.0 }
 0x802   :  { %v1255_v12 = vsel %vm306_vm0, %v1249_v9, 0.0  ;;  %v1252_v13 = vsel %vm306_vm0, %v1248_v10, 0.0  ;;  %v1261_v15 = vsel %vm306_vm0, %v1251_v14, 0.0  ;;  %v1258_v16 = vsel %vm306_vm0, %v1250_v33, 0.0 }
 0x803   :  { %1256 = vadd.xlane.f32.xlu1 %v1255_v12  ;;  %1253 = vadd.xlane.f32.xlu0 %v1252_v13  ;;  %vm3330_vm2 = vcmp.lt.s32.totalorder %v2510_v30, %v2508_v29  ;;  %v1448_v7 = vrot.slane %v1447_v55, 2 }
 0x805   :  { %v1449_v12 = vadd.f32 %v1448_v7, %v1447_v55 }
 0x807   :  { %1262 = vadd.xlane.f32.xlu1 %v1261_v15  ;;  %1259 = vadd.xlane.f32.xlu0 %v1258_v16  ;;  %v1450_v14 = vrot.slane %v1449_v12, 1 }
 0x809   :  { %v1451_v16 = vadd.f32 %v1450_v14, %v1449_v12 }
 0x88c   :  { %v1257_v17 = vpop.xlane.xlu1 %1256  ;;  %v1254_v27 = vpop.xlane.xlu0 %1253 }
 0x88d   :  { %vm1269_vm1 = vcmp.eq.f32.partialorder %v1247_v6, %v1257_v17  ;;  %v1856_v28 = vmul.f32 -1.442695, %v1257_v17  ;;  %vm1265_vm3 = vcmp.gt.f32.partialorder %v1247_v6, %v1257_v17  ;;  %vm1268_vm4 = vcmp.eq.f32.partialorder %v1247_v6, %v1254_v27 }
 0x88e   :  { %vm1273_vm13 = vmand %vm1269_vm1, %vm3329_vm11  ;;  %v1855_v35 = vmul.f32 -1.442695, %v1254_v27  ;;  %vm1264_vm15 = vcmp.gt.f32.partialorder %v1247_v6, %v1254_v27  ;;  %vm3333_vm1 = vcmp.lt.s32.totalorder %v2510_v30, %v2513_v31 }
 0x88f   :  { %2215 = vpow2.f32 %v1856_v28  ;;  %vm1272_vm10 = vmand %vm1268_vm4, %vm3330_vm2 }
 0x890   :  { %2217 = vpow2.f32 %v1855_v35  ;;  %v1263_v36 = vpop.xlane.xlu1 %1262  ;;  %v1260_v37 = vpop.xlane.xlu0 %1259  ;;  %vm2988_vm9 = vmor %vm1265_vm3, %vm1273_vm13 }
 0x891   :  { %vm1271_vm14 = vcmp.eq.f32.partialorder %v1247_v6, %v1263_v36  ;;  %v1858_v40 = vmul.f32 -1.442695, %v1263_v36  ;;  %vm1267_vm11 = vcmp.gt.f32.partialorder %v1247_v6, %v1263_v36  ;;  %vm1270_vm2 = vcmp.eq.f32.partialorder %v1247_v6, %v1260_v37  ;;  %vm3001_vm13 = vmor %vm1264_vm15, %vm1272_vm10 }
 0x892   :  { %vm1275_vm4 = vmand %vm1271_vm14, %vm3333_vm1  ;;  %v1857_v19 = vmul.f32 -1.442695, %v1260_v37  ;;  %vm1266_vm3 = vcmp.gt.f32.partialorder %v1247_v6, %v1260_v37  ;;  %vm3341_vm10 = vcmp.ge.f32.partialorder %v2896_v22, 8.0  ;;  %vm3342_vm1 = vcmp.lt.f32.partialorder %v2731_v47, 8.0 }
 0x893   :  { %2219 = vpow2.f32 %v1858_v40  ;;  %vm1274_vm6 = vmand %vm1270_vm2, %vm3336_vm8  ;;  %vm3343_vm2 = vcmp.gt.f32.partialorder %v2357_v1, -1e+20  ;;  %v1452_v37 = vmul.f32 0.125, %v1451_v16 }
 0x894   :  { %2221 = vpow2.f32 %v1857_v19  ;;  %vm3010_vm7 = vmor %vm1267_vm11, %vm1275_vm4  ;;  %v1503_v19 = vld [vmem:[%s3266_s10 + $0x70] sm:$0xff] }
 0x895   :  { %vm1281_vm15 = vmand %vm2988_vm9, %vm86_vm5  ;;  %vm3344_vm9 = vcmp.lt.f32.partialorder %v2743_v52, 8.0  ;;  %2112 = vmatpush3.msra.mxu0 %v1503_v19  ;;  %v1490_v19 = vld [vmem:[%s3266_s10 + $0x8] sm:$0xff] }
 0x896   :  { %vm3018_vm14 = vmor %vm1266_vm3, %vm1274_vm6  ;;  %v1356_v48 = vsel %vm3344_vm9, %v2684_v43, 0.0  ;;  %vm3346_vm6 = vcmp.ne.s32.totalorder %v2510_v30, %v2508_v29  ;;  %2113 = vmatprep.subr.mxu0 %v2231_v18 }
 0x897   :  { %vm1285_vm8 = vmand %vm1281_vm15, %vm583_vm12  ;;  %v1385_v43 = vsel %vm306_vm0, %v1356_v48, 0.0  ;;  %2114 = vmatpush3.msra.mxu0 %v1502_v23 }
 0x898   :  { %vm1289_vm11 = vmand %vm1285_vm8, %vm3341_vm10  ;;  %2115 = vmatprep.subr.mxu0 %v2231_v18 }
 0x899   :  { %vm1293_vm4 = vmand %vm1289_vm11, %vm3342_vm1  ;;  %vm3349_vm11 = vcmp.gt.f32.partialorder %v2391_v11, -1e+20  ;;  %2116 = vmatpush3.msra.mxu0 %v1501_v45 }
 0x89a   :  { %v1852_v8 = vsel %vm1293_vm4, 1.0, %v2231_v18  ;;  %vm1280_vm5 = vmand %vm3001_vm13, %vm3343_vm2  ;;  %vm3350_vm4 = vcmp.ne.s32.totalorder %v2510_v30, %v2513_v31  ;;  %2117 = vmatprep.subr.mxu0 %v2231_v18 }
 0x89b   :  { %vm3345_vm12 = vmmov %vm3342_vm1  ;;  %v1307_v38 = vsel %vm306_vm0, %v1852_v8, 0.0  ;;  %2118 = vmatpush3.msra.mxu0 %v1500_v20  ;;  %v1489_v20 = vld [vmem:[%s3266_s10] sm:$0xff] }
 0x89c   :  { %v1357_v34 = vsel %vm3345_vm12, %v2691_v44, 0.0  ;;  %vm1284_vm3 = vmand %vm1280_vm5, %vm3346_vm6  ;;  %v2216_v50 = vpop.eup %2215  ;;  %1308 = vadd.xlane.f32.xlu1 %v1307_v38  ;;  %vm3352_vm12 = vcmp.lt.f32.partialorder %v2710_v25, 8.0  ;;  %vm3353_vm6 = vcmp.gt.f32.partialorder %v2370_v5, -1e+20  ;;  %2119 = vmatprep.subr.mxu0 %v2231_v18 }
 0x89d   :  { %vm3347_vm15 = vmmov %vm3341_vm10  ;;  %v2218_v1 = vpop.eup %2217  ;;  %v1337_v51 = vadd.f32 1.0, %v2216_v50  ;;  %v1386_v44 = vsel %vm306_vm0, %v1357_v34, 0.0  ;;  %2120 = vmatpush3.msra.mxu0 %v1499_v21 }
 0x89e   :  { %vm1288_vm13 = vmand %vm1284_vm3, %vm3347_vm15  ;;  %v1336_v53 = vadd.f32 1.0, %v2218_v1  ;;  %v1387_v57 = vadd.f32 %v1386_v44, %v1385_v43  ;;  %2121 = vmatprep.subr.mxu0 %v2231_v18 }
 0x89f   :  { %vm3348_vm8 = vmmov %vm3344_vm9  ;;  %2223 = vrcp.f32 %v1337_v51  ;;  %2122 = vmatpush3.msra.mxu0 %v1498_v26 }
 0x8a0   :  { %vm1292_vm10 = vmand %vm1288_vm13, %vm3348_vm8  ;;  %v2220_v56 = vpop.eup %2219  ;;  %2225 = vrcp.f32 %v1336_v53  ;;  %v1388_v9 = vrot.slane %v1387_v57, 4  ;;  %2123 = vmatprep.subr.mxu0 %v2231_v18 }
 0x8a1   :  { %v1851_v54 = vsel %vm1292_vm10, 1.0, %v2231_v18  ;;  %vm1283_vm1 = vmand %vm3010_vm7, %vm3349_vm11  ;;  %v2222_v3 = vpop.eup %2221  ;;  %v1339_v11 = vadd.f32 1.0, %v2220_v56  ;;  %vm3356_vm11 = vcmp.lt.f32.partialorder %v2718_v24, 8.0  ;;  %2124 = vmatpush3.msra.mxu0 %v1497_v46  ;;  %v1494_v24 = vld [vmem:[%s3266_s10 + $0x28] sm:$0xff] }
 0x8a2   :  { %v1304_v29 = vsel %vm306_vm0, %v1851_v54, 0.0  ;;  %vm1287_vm2 = vmand %vm1283_vm1, %vm3350_vm4  ;;  %v1338_v4 = vadd.f32 1.0, %v2222_v3  ;;  %v1389_v13 = vadd.f32 %v1388_v9, %v1387_v57  ;;  %vm3358_vm4 = vcmask 7168   ;;  %2125 = vmatprep.subr.mxu0 %v2231_v18  ;;  %v1495_v57 = vld [vmem:[%s3266_s10 + $0x30] sm:$0xff] }
 0x8a3   :  { %1305 = vadd.xlane.f32.xlu0 %v1304_v29  ;;  %vm3351_vm5 = vmmov %vm3347_vm15  ;;  %2227 = vrcp.f32 %v1339_v11  ;;  %vm3354_vm15 = vcmp.ne.s32.totalorder %v2510_v30, %v2516_v32 }
 0x8a4   :  { %vm1291_vm9 = vmand %vm1287_vm2, %vm3351_vm5  ;;  %2229 = vrcp.f32 %v1338_v4  ;;  %v1390_v32 = vrot.slane %v1389_v13, 2  ;;  %vm3359_vm2 = vcmp.lt.f32.partialorder %v2743_v52, 8.0  ;;  %v1496_v52 = vld [vmem:[%s3266_s10 + $0x38] sm:$0xff] }
 0x8a5   :  { %vm1295_vm7 = vmand %vm1291_vm9, %vm3352_vm12  ;;  %2126 = vmatpush3.msra.mxu0 %v1496_v52  ;;  %v1861_v52 = vld [vmem:[%s3270_s13] ss:$0 sm:$0xff] }
 0x8a6   :  { %v1854_v6 = vsel %vm1295_vm7, 1.0, %v2231_v18  ;;  %vm1282_vm3 = vmand %vm3018_vm14, %vm3353_vm6  ;;  %vm3357_vm14 = vcmp.lt.f32.partialorder %v2731_v47, 8.0  ;;  %v1391_v27 = vadd.f32 %v1390_v32, %v1389_v13  ;;  %2127 = vmatprep.subr.mxu0 %v2231_v18 }
 0x8a7   :  { %v1313_v31 = vsel %vm306_vm0, %v1854_v6, 0.0  ;;  %vm1286_vm13 = vmand %vm1282_vm3, %vm3354_vm15  ;;  %2128 = vmatpush3.msra.mxu0 %v1495_v57 }
 0x8a8   :  { %1314 = vadd.xlane.f32.xlu1 %v1313_v31  ;;  %vm3355_vm8 = vmmov %vm3351_vm5  ;;  %v1392_v39 = vrot.slane %v1391_v27, 1  ;;  %2129 = vmatprep.subr.mxu0 %v2231_v18 }
 0x8a9   :  { %vm1290_vm10 = vmand %vm1286_vm13, %vm3355_vm8  ;;  %2130 = vmatpush3.msra.mxu0 %v1494_v24 }
 0x8aa   :  { %vm1294_vm1 = vmand %vm1290_vm10, %vm3356_vm11  ;;  %v1393_v40 = vadd.f32 %v1392_v39, %v1391_v27  ;;  %2131 = vmatprep.subr.mxu0 %v2231_v18  ;;  %v1491_v39 = vld [vmem:[%s3266_s10 + $0x10] sm:$0xff] }
 0x8ab   :  { %v1853_v5 = vsel %vm1294_vm1, 1.0, %v2231_v18  ;;  %vm3360_vm5 = vmmov %vm3358_vm4 }
 0x8ac   :  { %v1310_v10 = vsel %vm306_vm0, %v1853_v5, 0.0  ;;  %v2224_v30 = vpop.eup %2223  ;;  %vm3361_vm9 = vmmov %vm3352_vm12  ;;  %v1394_v41 = vmul.f32 0.125, %v1393_v40 }
 0x8ad   :  { %1311 = vadd.xlane.f32.xlu0 %v1310_v10  ;;  %v2226_v33 = vpop.eup %2225  ;;  %v1790_v15 = vsel %vm3357_vm14, %v2224_v30, 0.0  ;;  %vm3362_vm12 = vmmov %vm3358_vm4  ;;  %v1349_v48 = vmul.f32 %v2224_v30, %v1155_v0 }
 0x8ae   :  { %1794 = vst.msk [vmem:[%s3265_s21 + $0x8] sm:$0xff] %vm3358_vm4, %v1790_v15  ;;  %v1789_v22 = vsel %vm3359_vm2, %v2226_v33, 0.0  ;;  %vm3363_vm7 = vmmov %vm3356_vm11  ;;  %v1348_v50 = vmul.f32 %v2226_v33, %v1154_v2  ;;  %v1493_v33 = vld [vmem:[%s3266_s10 + $0x20] sm:$0xff] }
 0x8af   :  { %1793 = vst.msk [vmem:[%s3265_s21] sm:$0xff] %vm3360_vm5, %v1789_v22  ;;  %vm3364_vm6 = vmmov %vm3358_vm4  ;;  %2132 = vmatpush3.msra.mxu0 %v1493_v33 }
 0x8b0   :  { %v2228_v17 = vpop.eup %2227  ;;  %vm3365_vm15 = vmmov %vm3357_vm14  ;;  %2133 = vmatprep.subr.mxu0 %v2231_v18 }
 0x8b1   :  { %v3090_v28 = vpop.eup %2229  ;;  %v1792_v35 = vsel %vm3361_vm9, %v2228_v17, 0.0  ;;  %vm3366_vm10 = vmmov %vm3359_vm2  ;;  %v1351_v59 = vmul.f32 %v2228_v17, %v1157_v61  ;;  %vm1420_vm2 = vcmask 516352  }
 0x8b2   :  { %1796 = vst.msk [vmem:[%s3265_s21 + $0x18] sm:$0xff] %vm3362_vm12, %v1792_v35  ;;  %v1791_v36 = vsel %vm3363_vm7, %v3090_v28, 0.0  ;;  %vm3367_vm14 = vmmov %vm3361_vm9  ;;  %v1350_v4 = vmul.f32 %v3090_v28, %v1156_v63 }
 0x8b3   :  { %1795 = vst.msk [vmem:[%s3265_s21 + $0x10] sm:$0xff] %vm3364_vm6, %v1791_v36  ;;  %vm3370_vm9 = vmmov %vm3363_vm7  ;;  %vm1426_vm7 = vcmask 778752   ;;  %vm1432_vm6 = vcmask 1041152  }
 0x8b9   :  { %1474 = vrot.lane.b32.xlu1 %v1452_v37, %s2233_s4  ;;  %v1492_v37 = vld [vmem:[%s3266_s10 + $0x18] sm:$0xff] }
 0x8ba   :  { %2134 = vmatpush3.msra.mxu0 %v1492_v37 }
 0x8bb   :  { %2135 = vmatprep.subr.mxu0 %v2231_v18 }
 0x8bc   :  { %2136 = vmatpush3.msra.mxu0 %v1491_v39 }
 0x8bd   :  { %2137 = vmatprep.subr.mxu0 %v2231_v18 }
 0x8be   :  { %2138 = vmatpush3.msra.mxu0 %v1490_v19 }
 0x8bf   :  { %2139 = vmatprep.subr.mxu0 %v2231_v18 }
 0x8c0   :  { %2140 = vmatpush3.msra.mxu0 %v1489_v20 }
 0x8c3   :  { %1417 = vrot.lane.b32.xlu0 %v1394_v41, %s2233_s4 }
 0x925   :  { %v1309_v8 = vpop.xlane.xlu1 %1308 }
 0x926   :  { %vm1317_vm3 = vcmp.lt.f32.partialorder %v1309_v8, 4.0 }
 0x927   :  { %vm1321_vm13 = vmand %vm3365_vm15, %vm1317_vm3  ;;  %vm3371_vm3 = vmmov 0   ;;  %vm1782_vm15 = vcmask 1024  }
 0x928   :  { %v1369_v34 = vsel %vm1321_vm13, %v1349_v48, -1e+30  ;;  %v1373_v38 = vsel %vm1321_vm13, %v1349_v48, 0.0 }
 0x929   :  { %v1396_v1 = vsel %vm306_vm0, %v1369_v34, -inf  ;;  %v1405_v51 = vsel %vm306_vm0, %v1373_v38, 0.0 }
 0x92c   :  { %v1306_v49 = vpop.xlane.xlu0 %1305 }
 0x92d   :  { %vm1316_vm8 = vcmp.lt.f32.partialorder %v1306_v49, 4.0 }
 0x92e   :  { %vm1320_vm11 = vmand %vm3366_vm10, %vm1316_vm8 }
 0x92f   :  { %v1368_v58 = vsel %vm1320_vm11, %v1348_v50, -1e+30  ;;  %v1372_v0 = vsel %vm1320_vm11, %v1348_v50, 0.0 }
 0x930   :  { %v1395_v43 = vsel %vm306_vm0, %v1368_v58, -inf  ;;  %v1404_v47 = vsel %vm306_vm0, %v1372_v0, 0.0  ;;  %v1601_v58 = vld [vmem:[%s3267_s14 + $0x10] sm:$0xff]  ;;  %v1600_v0 = vld [vmem:[%s3267_s14 + $0x8] sm:$0xff] }
 0x931   :  { %v1315_v44 = vpop.xlane.xlu1 %1314  ;;  %v1397_v53 = vmax.f32 %v1395_v43, %v1396_v1  ;;  %v1406_v54 = vadd.f32 %v1405_v51, %v1404_v47  ;;  %v1602_v51 = vld [vmem:[%s3267_s14 + $0x18] sm:$0xff]  ;;  %v1599_v43 = vld [vmem:[%s3267_s14] sm:$0xff] }
 0x932   :  { %vm1319_vm1 = vcmp.lt.f32.partialorder %v1315_v44, 4.0  ;;  %2145 = vmatpush3.msra.mxu1 %v1602_v51  ;;  %v1859_v47 = vld [vmem:[%s3268_s11] ss:$0 sm:$0xff] }
 0x933   :  { %vm3153_vm4 = vmand %vm3367_vm14, %vm1319_vm1  ;;  %v1398_v29 = vrot.slane %v1397_v53, 4  ;;  %v1407_v55 = vrot.slane %v1406_v54, 4  ;;  %2146 = vmatprep.subr.mxu1 %v2231_v18 }
 0x934   :  { %v1371_v56 = vsel %vm3153_vm4, %v1351_v59, -1e+30  ;;  %v1375_v60 = vsel %vm3153_vm4, %v1351_v59, 0.0  ;;  %2147 = vmatpush3.msra.mxu1 %v1601_v58 }
 0x935   :  { %v1475_v25 = vpop.permute.xlu1 %1474  ;;  %v1399_v3 = vmax.f32 %v1397_v53, %v1398_v29  ;;  %v1408_v11 = vadd.f32 %v1407_v55, %v1406_v54  ;;  %v1454_v6 = vsel %vm306_vm0, %v1371_v56, -inf  ;;  %v1463_v31 = vsel %vm306_vm0, %v1375_v60, 0.0  ;;  %2148 = vmatprep.subr.mxu1 %v2231_v18  ;;  %v1860_v54 = vld [vmem:[%s3269_s12] ss:$0 sm:$0xff]  ;;  %v1701_v56 = vld [vmem:[%s3271_s18 + $0x8] sm:$0xff] }
 0x936   :  { %v1312_v61 = vpop.xlane.xlu0 %1311  ;;  %1477 = vst.msk [vmem:[#allocation2 + $0x1] sm:$0x1] %vm1420_vm2, %v1475_v25  ;;  %2149 = vmatpush3.msra.mxu1 %v1600_v0  ;;  %v1700_v60 = vld [vmem:[%s3271_s18] sm:$0xff] }
 0x937   :  { %vm1318_vm5 = vcmp.lt.f32.partialorder %v1312_v61, 4.0  ;;  %v1400_v5 = vrot.slane %v1399_v3, 2  ;;  %v1409_v10 = vrot.slane %v1408_v11, 2  ;;  %2150 = vmatprep.subr.mxu1 %v2231_v18  ;;  %v28_v61 = vstv %s3272_s19  ;;  %v1862_v25 = vld [vmem:[%s3273_s15] ss:$0 sm:$0xff] }
 0x938   :  { %vm1322_vm12 = vmand %vm3370_vm9, %vm1318_vm5  ;;  %2151 = vmatpush3.msra.mxu1 %v1599_v43  ;;  %29 = vst [vmem:[#allocation3] sm:$0x1] %v28_v61 }
 0x939   :  { %v1370_v7 = vsel %vm1322_vm12, %v1350_v4, -1e+30  ;;  %v1374_v9 = vsel %vm1322_vm12, %v1350_v4, 0.0  ;;  %v1401_v30 = vmax.f32 %v1399_v3, %v1400_v5  ;;  %v1410_v32 = vadd.f32 %v1409_v10, %v1408_v11  ;;  %2155 = vmatprep.subr.mxu1 %v2231_v18 }
 0x93a   :  { %v1453_v62 = vsel %vm306_vm0, %v1370_v7, -inf  ;;  %v1462_v63 = vsel %vm306_vm0, %v1374_v9, 0.0  ;;  %v1418_v12 = vpop.permute.xlu0 %1417 }
 0x93b   :  { %v1455_v13 = vmax.f32 %v1453_v62, %v1454_v6  ;;  %v1464_v14 = vadd.f32 %v1463_v31, %v1462_v63  ;;  %1421 = vst.msk [vmem:[#allocation2] sm:$0x1] %vm1420_vm2, %v1418_v12  ;;  %v1402_v16 = vrot.slane %v1401_v30, 1  ;;  %v1411_v17 = vrot.slane %v1410_v32, 1  ;;  %v1865_v6 = vld [vmem:[%s3275_s17] ss:$0 sm:$0xff] }
 0x93d   :  { %v1456_v15 = vrot.slane %v1455_v13, 4  ;;  %v1465_v22 = vrot.slane %v1464_v14, 4  ;;  %v1403_v35 = vmax.f32 %v1401_v30, %v1402_v16  ;;  %v1412_v36 = vadd.f32 %v1411_v17, %v1410_v32 }
 0x93f   :  { %v1457_v27 = vmax.f32 %v1455_v13, %v1456_v15  ;;  %v1466_v28 = vadd.f32 %v1465_v22, %v1464_v14  ;;  %1423 = vrot.lane.b32.xlu1 %v1403_v35, %s2234_s29  ;;  %v1413_v40 = vmul.f32 0.25, %v1412_v36  ;;  %v1866_v9 = vld [vmem:[#allocation3] ss:$0 sm:$0xff] }
 0x941   :  { %v1458_v41 = vrot.slane %v1457_v27, 2  ;;  %v1467_v42 = vrot.slane %v1466_v28, 2  ;;  %1429 = vrot.lane.b32.xlu0 %v1413_v40, %s2235_s9 }
 0x943   :  { %v1459_v23 = vmax.f32 %v1457_v27, %v1458_v41  ;;  %v1468_v45 = vadd.f32 %v1467_v42, %v1466_v28 }
 0x945   :  { %v1460_v21 = vrot.slane %v1459_v23, 1  ;;  %v1469_v26 = vrot.slane %v1468_v45, 1 }
 0x947   :  { %v1461_v46 = vmax.f32 %v1459_v23, %v1460_v21  ;;  %v1470_v8 = vadd.f32 %v1469_v26, %v1468_v45 }
 0x949   :  { %1479 = vrot.lane.b32.xlu1 %v1461_v46, %s2234_s29  ;;  %v1471_v48 = vmul.f32 0.25, %v1470_v8 }
 0x94d   :  { %1484 = vrot.lane.b32.xlu1 %v1471_v48, %s2235_s9 }
 0x9b1   :  { %v1424_v34 = vpop.permute.xlu1 %1423 }
 0x9b2   :  { %1427 = vst.msk [vmem:[#allocation2] sm:$0x1] %vm1426_vm7, %v1424_v34 }
 0x9b3   :  { %v1430_v38 = vpop.permute.xlu0 %1429 }
 0x9b4   :  { %1433 = vst.msk [vmem:[#allocation2] sm:$0x1] %vm1432_vm6, %v1430_v38 }
 0x9bb   :  { %v1480_v49 = vpop.permute.xlu1 %1479 }
 0x9bc   :  { %1482 = vst.msk [vmem:[#allocation2 + $0x1] sm:$0x1] %vm1426_vm7, %v1480_v49 }
 0x9bf   :  { %v1485_v50 = vpop.permute.xlu1 %1484 }
 0x9c0   :  { %1487 = vst.msk [vmem:[#allocation2 + $0x1] sm:$0x1] %vm1432_vm6, %v1485_v50 }
 0x9c7   :  { %v1488_v1 = vld [vmem:[#allocation2] sm:$0x3] }
 0x9c8   :  { %2142 = vmatmul.mubr.f32.vlgmr.msra.gmra.mxu0 %v1488_v1 }
 0xa88   :  { %v1578_v44 = vpop.f32.mrf.mxu0 }
 0xa89   :  { %v1579_v53 = vadd.f32 %v1859_v47, %v1578_v44 }
 0xa8a   :  { %v2143_v59 = vpop.f32.mrf.mxu0 }
 0xa8b   :  { %v1582_v2 = vmax.f32 %v1579_v53, 0.0 }
 0xa8d   :  { %v1590_v29 = vmul.f32 %v1860_v54, %v1582_v2 }
 0xa8f   :  { %v1598_v55 = vadd.f32 %v1861_v52, %v1590_v29 }
 0xa91   :  { %2153 = vmatmul.mubr.msk.f32.vlgmr.msra.gmra.mxu1 %vm306_vm0, %v1598_v55  ;;  %vm3372_vm0 = vcmask 130048  }
 0xa92   :  { %2159 = vmatprep.mubr.msk.f32.mxu1 %vm3371_vm3, %v2231_v18  ;;  %2156 = vmatpush3.msra.mxu1 %v1701_v56 }
 0xa93   :  { %2157 = vmatprep.subr.mxu1 %v2231_v18  ;;  %v1864_v18 = vld [vmem:[%s3274_s16] ss:$0 sm:$0xff] }
 0xa94   :  { %2158 = vmatpush3.msra.mxu1 %v1700_v60 }
 0xb51   :  { %v1679_v57 = vpop.f32.mrf.mxu1 }
 0xb52   :  { %v1680_v3 = vadd.f32 %v1862_v25, %v1679_v57 }
 0xb53   :  { %v2154_v11 = vpop.f32.mrf.mxu1 }
 0xb54   :  { %v1683_v4 = vmax.f32 %v1680_v3, 0.0 }
 0xb56   :  { %v1691_v31 = vmul.f32 %v1864_v18, %v1683_v4 }
 0xb58   :  { %v1699_v7 = vadd.f32 %v1865_v6, %v1691_v31 }
 0xb5a   :  { %2160 = vmatmul.mubr.msk.f32.vlgmr.msra.gmra.mxu1 %vm3372_vm0, %v1699_v7 }
 0xc1a   :  { %v1778_v5 = vpop.f32.mrf.mxu1 }
 0xc1b   :  { %v1779_v10 = vadd.f32 %v1866_v9, %v1778_v5 }
 0xc1c   :  { %v2161_v62 = vpop.f32.mrf.mxu1 }
 0xc1d   :  { %1783 = vst.msk [vmem:[%s3276_s22] sm:$0x3] %vm1782_vm15, %v1779_v10 }

</bundles_post_ra>
